<compile_context>
chip_gen: v7x
topology: tpu7x:2x2x1
jax: 0.10.0
libtpu: 0.0.40
codegen_flags: <defaults>
</compile_context>

<pallas_src>
import jax
import jax.numpy as jnp
from jax.experimental import pallas as pl
from jax.experimental.pallas import tpu as pltpu

Class_Count = 3
J = 40
Sample_Length = 6400
N = Sample_Length // J          # 160
K = 7 * N                       # 1120

H_PAD = 1152                    # lin1 output dim padded to 9 * 128 (lane-dense)
OUT_PAD = 128                   # lin2 output padded lane-dense (Class_Count=3 -> 128)
TM_MEAN = 8                     # M tile of the group-mean pre-pass


def _round_up(a, b):
    return (a + b - 1) // b * b


def group_mean_kernel(x_ref, feats_ref):
    # x_ref:     (TM_MEAN, J, K) f32
    # feats_ref: (TM_MEAN, K)    bf16
    total = jnp.sum(x_ref[...], axis=1)                     # sublane reduce over J
    feats_ref[...] = (total * (1.0 / J)).astype(jnp.bfloat16)


def classifier_kernel(feats_ref, w1t_ref, w2t_ref, out_ref, hid_ref):
    # feats_ref: (TM, K)          bf16  — group-mean features
    # w1t_ref:   (K, H_PAD)       bf16  — resident lin1 weight (fetched once)
    # w2t_ref:   (H_PAD, OUT_PAD) bf16  — resident lin2 weight (fetched once)
    # out_ref:   (TM, OUT_PAD)    f32
    # hid_ref:   (TM, H_PAD)      bf16  — hidden activations scratch
    hid_ref[...] = jnp.maximum(
        jnp.dot(feats_ref[...], w1t_ref[...], preferred_element_type=jnp.float32),
        0.0,
    ).astype(jnp.bfloat16)
    # Dropout(p=0.9): identity at inference.
    # TODO(synk): training-mode dropout (mask + 1/(1-p) scaling) not reproduced.
    out_ref[...] = jnp.dot(hid_ref[...], w2t_ref[...],
                           preferred_element_type=jnp.float32)


def classifier_forward(x, w1, w2):
    """x: (M*J, K) f32; w1: (K, K), w2: (Class_Count, K) — PyTorch Linear layout."""
    MJ, k = x.shape
    assert k == K and MJ % J == 0, "x must be (M*J, K)"
    M = MJ // J

    # M tile: >=128 rows for MXU occupancy on large M; single small block otherwise.
    # (256 is also viable on v6e/v7x; 128 keeps one plan for all generations.)
    TM = min(128, _round_up(M, 8))
    M_pad = _round_up(M, TM)                 # multiple of TM, hence of TM_MEAN (=8)

    # ---- group-mean pre-pass (Pallas): (M_pad, J, K) f32 -> (M_pad, K) bf16 ----
    x_mjk = jnp.pad(x.reshape(M, J, K), ((0, M_pad - M), (0, 0), (0, 0)))
    feats = pl.pallas_call(
        group_mean_kernel,
        out_shape=jax.ShapeDtypeStruct((M_pad, K), jnp.bfloat16),
        grid=(M_pad // TM_MEAN,),
        in_specs=[pl.BlockSpec((TM_MEAN, J, K), lambda m: (m, 0, 0))],
        out_specs=pl.BlockSpec((TM_MEAN, K), lambda m: (m, 0)),
        compiler_params=pltpu.CompilerParams(
            dimension_semantics=("parallel",),
            vmem_limit_bytes=8 << 20,
        ),
    )(x_mjk)

    # ---- weights: pre-transposed to (in, out), zero-padded lane-dense, bf16 ----
    # Zero-padded hidden units stay exactly zero through ReLU and add nothing to lin2.
    w1t = jnp.pad(w1.T, ((0, 0), (0, H_PAD - K))).astype(jnp.bfloat16)            # (K, H_PAD)
    w2t = jnp.pad(w2.T, ((0, H_PAD - K), (0, OUT_PAD - Class_Count))
                  ).astype(jnp.bfloat16)                                           # (H_PAD, OUT_PAD)

    # ---- fused MLP kernel: grid over M blocks only; weights fully resident ----
    out = pl.pallas_call(
        classifier_kernel,
        out_shape=jax.ShapeDtypeStruct((M_pad, OUT_PAD), jnp.float32),
        grid=(M_pad // TM,),
        in_specs=[
            pl.BlockSpec((TM, K), lambda m: (m, 0)),             # feats block
            pl.BlockSpec((K, H_PAD), lambda m: (0, 0)),          # w1: constant index -> one fetch
            pl.BlockSpec((H_PAD, OUT_PAD), lambda m: (0, 0)),    # w2: constant index -> one fetch
        ],
        out_specs=pl.BlockSpec((TM, OUT_PAD), lambda m: (m, 0)),
        scratch_shapes=[pltpu.VMEM((TM, H_PAD), jnp.bfloat16)],  # hidden activations
        compiler_params=pltpu.CompilerParams(
            dimension_semantics=("parallel",),
            vmem_limit_bytes=16 << 20,
        ),
    )(feats, w1t, w2t)

    return out[:M, :Class_Count]


if __name__ == "__main__":
    key = jax.random.PRNGKey(0)
    kx, k1, k2 = jax.random.split(key, 3)

    M = 2                                     # small number of averaged groups
    x = jax.random.normal(kx, (M * J, K), dtype=jnp.float32)   # (80, 1120)

    # Deterministic weight init (PyTorch-Linear-style uniform(-1/sqrt(in), 1/sqrt(in)))
    bound = 1.0 / (K ** 0.5)
    w1 = jax.random.uniform(k1, (K, K), jnp.float32, -bound, bound)            # lin1.weight
    w2 = jax.random.uniform(k2, (Class_Count, K), jnp.float32, -bound, bound)  # lin2.weight

    logits = jax.block_until_ready(classifier_forward(x, w1, w2))

    # Pure-JAX f32 reference; tolerance loosened for the bf16 weight/feature stream.
    feats_ref = x.reshape(M, J, K).mean(axis=1)
    ref = jnp.maximum(feats_ref @ w1.T, 0.0) @ w2.T
    assert logits.shape == (M, Class_Count)
    assert jnp.allclose(logits, ref, atol=5e-2, rtol=5e-2)

    print("KERNEL_OK")
</pallas_src>

<mosaic_0001>
module attributes {stable_mosaic.version = 11 : i64} {
  func.func @group_mean_kernel(%arg0: i32, %arg1: memref<8x40x1120xf32, #tpu.memory_space<vmem>>, %arg2: memref<8x1120xbf16, #tpu.memory_space<vmem>>) attributes {dimension_semantics = [#tpu.dimension_semantics<parallel>], iteration_bounds = array<i64: 1>, scalar_prefetch = 0 : i64, scratch_operands = 0 : i64, tpu.core_type = #tpu.core_type<tc>, window_params = [{transform_indices = @transform_0, window_bounds = array<i64: 8, 40, 1120>}, {transform_indices = @transform_1, window_bounds = array<i64: 8, 1120>}]} {
    %c0 = arith.constant 0 : index
    %c0_0 = arith.constant 0 : index
    %c0_1 = arith.constant 0 : index
    %0 = vector.load %arg1[%c0, %c0_0, %c0_1] : memref<8x40x1120xf32, #tpu.memory_space<vmem>>, vector<8x40x1120xf32>
    %cst = arith.constant dense<0.000000e+00> : vector<8x1120xf32>
    %1 = vector.multi_reduction <add>, %0, %cst [1] : vector<8x40x1120xf32> to vector<8x1120xf32>
    %cst_2 = arith.constant 2.500000e-02 : f32
    %2 = vector.broadcast %cst_2 : f32 to vector<8x1120xf32>
    %3 = arith.mulf %1, %2 : vector<8x1120xf32>
    %4 = arith.truncf %3 : vector<8x1120xf32> to vector<8x1120xbf16>
    %c0_3 = arith.constant 0 : index
    %c0_4 = arith.constant 0 : index
    %5 = vector.load %arg2[%c0_3, %c0_4] : memref<8x1120xbf16, #tpu.memory_space<vmem>>, vector<8x1120xbf16>
    tpu.vector_store %arg2[%c0_3, %c0_4], %4 {strides = array<i32>} : memref<8x1120xbf16, #tpu.memory_space<vmem>>, vector<8x1120xbf16>,
    return
  }
  func.func @transform_0(%arg0: i32) -> (i32, i32, i32) {
    %c0_i32 = arith.constant 0 : i32
    %c0_i32_0 = arith.constant 0 : i32
    %c0_i32_1 = arith.constant 0 : i32
    return %arg0, %c0_i32, %c0_i32_0 : i32, i32, i32
  }
  func.func @transform_1(%arg0: i32) -> (i32, i32) {
    %c0_i32 = arith.constant 0 : i32
    %c0_i32_0 = arith.constant 0 : i32
    return %arg0, %c0_i32 : i32, i32
  }
}

</mosaic_0001>

<bundles_post_ra>
// kernel: tpu_custom_call.1
= control target key start
LH: loop header
LB: loop body
LE: loop exit
PB: predicated region body
PF: predicated region fallthrough
CT: control target
= control target key end

     0   :  { %6 = vsyncpa [#allocation3], 0  ;;  %s2423_s0 = inlined_call_operand.hbm [shape: f32[8,40,1120], index: 0, kind: input, shape index: {}]   ;;  %s2424_s1 = inlined_call_operand.hbm [shape: bf16[8,1120], index: 1, kind: output, shape index: {}]  }
   0x1   :  { %7 = vsyncpa [#allocation4], 0  ;;  %s1777_s6 = smov [#allocation2]   ;;  %s1729_s10 = scalar_lea.hbm %s2423_s0, 46080 }
   0x2   :  { %s13_s7 = sshll.u32 %s1777_s6, 4  ;;  %p1730_p0 = scmp.ne.s32.totalorder %s2423_s0, %s1729_s10  ;;  %s14_s7 = int_to_ptr.vmem [resolvable:$true] %s13_s7 }
   0x3   :  { %p1733_p1 = scmp.lt.u32.totalorder %s1729_s10, %s2423_s0 }
   0x5   :  { %p1735_p2 = pnand %p1733_p1, %p1730_p0 }
   0x7   :  { %1738 = shalt.err (!%p1735_p2)
}
   0x8   :  { %s1739_s15 = scalar_lea.vmem %s14_s7, 46080  ;;  %p1744_p4 = scmp.lt.s32.totalorder %s14_s7, %s14_s7 }
   0x9   :  { %p1740_p3 = scmp.ne.s32.totalorder %s14_s7, %s1739_s15  ;;  %p1745_p5 = scmp.lt.s32.totalorder %s1739_s15, %s1739_s15 }
   0xb   :  { %p1746_p6 = por %p1745_p5, %p1744_p4 }
   0xd   :  { %p1747_p7 = pnand %p1746_p6, %p1740_p3 }
   0xf   :  { %1750 = shalt.err (!%p1747_p7)
}
  0x10   :  { %s1778_s16 = smov 1152   ;;  %s1779_s17 = smov 72  }
  0x11   :  { %19 = dma.hbm_to_vmem [thread:$0]  %s2423_s0, 46080, %s14_s7, [#allocation3], %s1778_s16, %s1778_s16, %s1779_s17  }
  0x12   :  { %1773 = dma.done.wait [#allocation3], 46080  }
  0x13   :  { %1774 = vsyncadd [#allocation3], 4294921216  ;;  %v23_v0 = vld [vmem:[#allocation2] sm:$0xff]  ;;  %v24_v1 = vld [vmem:[#allocation2 + $0x8] sm:$0xff]  ;;  %vm463_vm0 = vcmask 785408   ;;  %vm1544_vm1 = vcmask 1041409  }
  0x14   :  { %v25_v2 = vld [vmem:[#allocation2 + $0x10] sm:$0xff]  ;;  %v26_v3 = vld [vmem:[#allocation2 + $0x18] sm:$0xff]  ;;  %v27_v4 = vld [vmem:[#allocation2 + $0x20] sm:$0xff]  ;;  %vm1546_vm2 = vcmask 1042434   ;;  %vm1548_vm3 = vcmask 1043459   ;;  %vm1550_vm4 = vcmask 1044484  }
  0x15   :  { %v28_v5 = vld [vmem:[#allocation2 + $0x28] sm:$0xff]  ;;  %v29_v6 = vld [vmem:[#allocation2 + $0x30] sm:$0xff]  ;;  %v30_v7 = vld [vmem:[#allocation2 + $0x38] sm:$0xff]  ;;  %vm1552_vm5 = vcmask 1045509   ;;  %vm1554_vm6 = vcmask 1046534   ;;  %vm1556_vm7 = vcmask 1047559  }
  0x16   :  { %v31_v8 = vld [vmem:[#allocation2 + $0x40] sm:$0xff]  ;;  %v32_v9 = vld [vmem:[#allocation2 + $0x48] sm:$0xff]  ;;  %v33_v10 = vld [vmem:[#allocation2 + $0x50] sm:$0xff]  ;;  %s1780_s0 = smov [#allocation5]   ;;  %vm1628_vm8 = vcmask 781312  }
  0x17   :  { %v34_v11 = vld [vmem:[#allocation2 + $0x58] sm:$0xff]  ;;  %v35_v12 = vld [vmem:[#allocation2 + $0x60] sm:$0xff]  ;;  %v36_v13 = vld [vmem:[#allocation2 + $0x68] sm:$0xff]  ;;  %v383_v15 = vadd.f32 %v32_v9, %v23_v0  ;;  %v393_v16 = vadd.f32 %v33_v10, %v24_v1  ;;  %v464_v18 = vsel %vm463_vm0, %v31_v8, 0.0  ;;  %s1636_s20 = sshll.u32 %s1780_s0, 4  ;;  %s1637_s20 = int_to_ptr.vmem [resolvable:$true] %s1636_s20 }
  0x18   :  { %v37_v14 = vld [vmem:[#allocation2 + $0x70] sm:$0xff]  ;;  %v403_v17 = vadd.f32 %v34_v11, %v25_v2  ;;  %v38_v19 = vld [vmem:[#allocation2 + $0x78] sm:$0xff]  ;;  %v39_v20 = vld [vmem:[#allocation2 + $0x80] sm:$0xff]  ;;  %v413_v22 = vadd.f32 %v35_v12, %v26_v3  ;;  %v423_v23 = vadd.f32 %v36_v13, %v27_v4  ;;  %s1751_s21 = scalar_lea.vmem %s1637_s20, 576  ;;  %p1756_p9 = scmp.lt.s32.totalorder %s1637_s20, %s1637_s20 }
  0x19   :  { %v40_v21 = vld [vmem:[#allocation2 + $0x88] sm:$0xff]  ;;  %v433_v24 = vadd.f32 %v37_v14, %v28_v5  ;;  %v41_v25 = vld [vmem:[#allocation2 + $0x90] sm:$0xff]  ;;  %v42_v26 = vld [vmem:[#allocation2 + $0x98] sm:$0xff]  ;;  %v443_v28 = vadd.f32 %v38_v19, %v29_v6  ;;  %v453_v29 = vadd.f32 %v39_v20, %v30_v7  ;;  %p1752_p8 = scmp.ne.s32.totalorder %s1637_s20, %s1751_s21  ;;  %p1757_p10 = scmp.lt.s32.totalorder %s1751_s21, %s1751_s21 }
  0x1a   :  { %v43_v27 = vld [vmem:[#allocation2 + $0xa0] sm:$0xff]  ;;  %v465_v30 = vsel %vm463_vm0, %v40_v21, 0.0  ;;  %v44_v31 = vld [vmem:[#allocation2 + $0xa8] sm:$0xff]  ;;  %v45_v32 = vld [vmem:[#allocation2 + $0xb0] sm:$0xff]  ;;  %v384_v34 = vadd.f32 %v383_v15, %v41_v25  ;;  %v394_v35 = vadd.f32 %v393_v16, %v42_v26 }
  0x1b   :  { %v46_v33 = vld [vmem:[#allocation2 + $0xb8] sm:$0xff]  ;;  %v404_v36 = vadd.f32 %v403_v17, %v43_v27  ;;  %v466_v37 = vadd.f32 %v465_v30, %v464_v18  ;;  %v47_v38 = vld [vmem:[#allocation2 + $0xc0] sm:$0xff]  ;;  %v48_v39 = vld [vmem:[#allocation2 + $0xc8] sm:$0xff]  ;;  %v414_v41 = vadd.f32 %v413_v22, %v44_v31  ;;  %v424_v42 = vadd.f32 %v423_v23, %v45_v32  ;;  %p1758_p11 = por %p1757_p10, %p1756_p9 }
  0x1c   :  { %v49_v40 = vld [vmem:[#allocation2 + $0xd0] sm:$0xff]  ;;  %v434_v43 = vadd.f32 %v433_v24, %v46_v33  ;;  %v50_v44 = vld [vmem:[#allocation2 + $0xd8] sm:$0xff]  ;;  %v51_v45 = vld [vmem:[#allocation2 + $0xe0] sm:$0xff]  ;;  %v444_v47 = vadd.f32 %v443_v28, %v47_v38  ;;  %v454_v48 = vadd.f32 %v453_v29, %v48_v39 }
  0x1d   :  { %v52_v46 = vld [vmem:[#allocation2 + $0xe8] sm:$0xff]  ;;  %v467_v49 = vsel %vm463_vm0, %v49_v40, 0.0  ;;  %v53_v50 = vld [vmem:[#allocation2 + $0xf0] sm:$0xff]  ;;  %v54_v51 = vld [vmem:[#allocation2 + $0xf8] sm:$0xff]  ;;  %v385_v53 = vadd.f32 %v384_v34, %v50_v44  ;;  %v395_v54 = vadd.f32 %v394_v35, %v51_v45  ;;  %p1759_p12 = pnand %p1758_p11, %p1752_p8 }
  0x1e   :  { %v55_v52 = vld [vmem:[#allocation2 + $0x100] sm:$0xff]  ;;  %v405_v55 = vadd.f32 %v404_v36, %v52_v46  ;;  %v468_v56 = vadd.f32 %v467_v49, %v466_v37  ;;  %v56_v57 = vld [vmem:[#allocation2 + $0x108] sm:$0xff]  ;;  %v57_v58 = vld [vmem:[#allocation2 + $0x110] sm:$0xff]  ;;  %v415_v60 = vadd.f32 %v414_v41, %v53_v50  ;;  %v425_v61 = vadd.f32 %v424_v42, %v54_v51 }
  0x1f   :  { %v58_v59 = vld [vmem:[#allocation2 + $0x118] sm:$0xff]  ;;  %v435_v62 = vadd.f32 %v434_v43, %v55_v52  ;;  %v59_v63 = vld [vmem:[#allocation2 + $0x120] sm:$0xff]  ;;  %v60_v0 = vld [vmem:[#allocation2 + $0x128] sm:$0xff]  ;;  %v445_v2 = vadd.f32 %v444_v47, %v56_v57  ;;  %v455_v3 = vadd.f32 %v454_v48, %v57_v58 }
  0x20   :  { %v61_v1 = vld [vmem:[#allocation2 + $0x130] sm:$0xff]  ;;  %v469_v4 = vsel %vm463_vm0, %v58_v59, 0.0  ;;  %v62_v5 = vld [vmem:[#allocation2 + $0x138] sm:$0xff]  ;;  %v63_v6 = vld [vmem:[#allocation2 + $0x140] sm:$0xff]  ;;  %v386_v8 = vadd.f32 %v385_v53, %v59_v63  ;;  %v396_v9 = vadd.f32 %v395_v54, %v60_v0 }
  0x21   :  { %v64_v7 = vld [vmem:[#allocation2 + $0x148] sm:$0xff]  ;;  %v406_v10 = vadd.f32 %v405_v55, %v61_v1  ;;  %v65_v11 = vld [vmem:[#allocation2 + $0x150] sm:$0xff]  ;;  %v66_v12 = vld [vmem:[#allocation2 + $0x158] sm:$0xff]  ;;  %v416_v13 = vadd.f32 %v415_v60, %v62_v5  ;;  %v426_v14 = vadd.f32 %v425_v61, %v63_v6  ;;  %v1807_v16 = vadd.f32 %v469_v4, %v468_v56 }
  0x22   :  { %v436_v15 = vadd.f32 %v435_v62, %v64_v7  ;;  %v387_v17 = vrot.slane %v386_v8, 4  ;;  %v397_v18 = vrot.slane %v396_v9, 4  ;;  %v446_v20 = vadd.f32 %v445_v2, %v65_v11  ;;  %v67_v45 = vld [vmem:[#allocation2 + $0x160] sm:$0xff]  ;;  %v68_v46 = vld [vmem:[#allocation2 + $0x168] sm:$0xff]  ;;  %v69_v47 = vld [vmem:[#allocation2 + $0x170] sm:$0xff] }
  0x23   :  { %v407_v19 = vrot.slane %v406_v10, 4  ;;  %v417_v21 = vrot.slane %v416_v13, 4  ;;  %v427_v22 = vrot.slane %v426_v14, 4  ;;  %v456_v24 = vadd.f32 %v455_v3, %v66_v12  ;;  %v70_v52 = vld [vmem:[#allocation2 + $0x178] sm:$0xff]  ;;  %v71_v53 = vld [vmem:[#allocation2 + $0x180] sm:$0xff]  ;;  %v77_v54 = vld [vmem:[#allocation2 + $0x1b0] sm:$0xff] }
  0x24   :  { %v437_v23 = vrot.slane %v436_v15, 4  ;;  %v388_v25 = vadd.f32 %v387_v17, %v386_v8  ;;  %v398_v26 = vadd.f32 %v397_v18, %v396_v9  ;;  %v447_v28 = vrot.slane %v446_v20, 4  ;;  %v72_v59 = vld [vmem:[#allocation2 + $0x188] sm:$0xff]  ;;  %v73_v60 = vld [vmem:[#allocation2 + $0x190] sm:$0xff]  ;;  %v78_v61 = vld [vmem:[#allocation2 + $0x1b8] sm:$0xff] }
  0x25   :  { %v408_v27 = vadd.f32 %v407_v19, %v406_v10  ;;  %v418_v29 = vadd.f32 %v417_v21, %v416_v13  ;;  %v428_v30 = vadd.f32 %v427_v22, %v426_v14  ;;  %v457_v32 = vrot.slane %v456_v24, 4  ;;  %v79_v62 = vld [vmem:[#allocation2 + $0x1c0] sm:$0xff]  ;;  %v80_v63 = vld [vmem:[#allocation2 + $0x1c8] sm:$0xff]  ;;  %v74_v4 = vld [vmem:[#allocation2 + $0x198] sm:$0xff] }
  0x26   :  { %v438_v31 = vadd.f32 %v437_v23, %v436_v15  ;;  %v389_v33 = vrot.slane %v388_v25, 2  ;;  %v399_v34 = vrot.slane %v398_v26, 2  ;;  %v448_v36 = vadd.f32 %v447_v28, %v446_v20  ;;  %v81_v5 = vld [vmem:[#allocation2 + $0x1d0] sm:$0xff]  ;;  %v82_v6 = vld [vmem:[#allocation2 + $0x1d8] sm:$0xff]  ;;  %v83_v7 = vld [vmem:[#allocation2 + $0x1e0] sm:$0xff] }
  0x27   :  { %v409_v35 = vrot.slane %v408_v27, 2  ;;  %v419_v37 = vrot.slane %v418_v29, 2  ;;  %v429_v38 = vrot.slane %v428_v30, 2  ;;  %v458_v40 = vadd.f32 %v457_v32, %v456_v24  ;;  %v86_v12 = vld [vmem:[#allocation2 + $0x1f8] sm:$0xff]  ;;  %v87_v13 = vld [vmem:[#allocation2 + $0x200] sm:$0xff]  ;;  %v88_v14 = vld [vmem:[#allocation2 + $0x208] sm:$0xff] }
  0x28   :  { %v439_v39 = vrot.slane %v438_v31, 2  ;;  %v390_v41 = vadd.f32 %v389_v33, %v388_v25  ;;  %v400_v42 = vadd.f32 %v399_v34, %v398_v26  ;;  %v449_v44 = vrot.slane %v448_v36, 2  ;;  %v89_v20 = vld [vmem:[#allocation2 + $0x210] sm:$0xff]  ;;  %v90_v21 = vld [vmem:[#allocation2 + $0x218] sm:$0xff]  ;;  %v91_v22 = vld [vmem:[#allocation2 + $0x220] sm:$0xff] }
  0x29   :  { %v410_v43 = vadd.f32 %v409_v35, %v408_v27  ;;  %v420_v48 = vadd.f32 %v419_v37, %v418_v29  ;;  %v430_v49 = vadd.f32 %v429_v38, %v428_v30  ;;  %v459_v51 = vrot.slane %v458_v40, 2  ;;  %v92_v27 = vld [vmem:[#allocation2 + $0x228] sm:$0xff]  ;;  %v95_v28 = vld [vmem:[#allocation2 + $0x240] sm:$0xff]  ;;  %v97_v34 = vld [vmem:[#allocation2 + $0x250] sm:$0xff] }
  0x2a   :  { %v440_v50 = vadd.f32 %v439_v39, %v438_v31  ;;  %v391_v55 = vrot.slane %v390_v41, 1  ;;  %v401_v56 = vrot.slane %v400_v42, 1  ;;  %v450_v58 = vadd.f32 %v449_v44, %v448_v36  ;;  %v96_v29 = vld [vmem:[#allocation2 + $0x248] sm:$0xff]  ;;  %v98_v35 = vld [vmem:[#allocation2 + $0x258] sm:$0xff]  ;;  %v99_v36 = vld [vmem:[#allocation2 + $0x260] sm:$0xff] }
  0x2b   :  { %v411_v57 = vrot.slane %v410_v43, 1  ;;  %v421_v0 = vrot.slane %v420_v48, 1  ;;  %v431_v1 = vrot.slane %v430_v49, 1  ;;  %v460_v3 = vadd.f32 %v459_v51, %v458_v40 }
  0x2c   :  { %v441_v2 = vrot.slane %v440_v50, 1  ;;  %v1809_v8 = vadd.f32 %v391_v55, %v390_v41  ;;  %v1811_v9 = vadd.f32 %v401_v56, %v400_v42  ;;  %v451_v11 = vrot.slane %v450_v58, 1  ;;  %v100_v41 = vld [vmem:[#allocation2 + $0x268] sm:$0xff]  ;;  %v109_v55 = vld [vmem:[#allocation2 + $0x2b0] sm:$0xff] }
  0x2d   :  { %v1813_v10 = vadd.f32 %v411_v57, %v410_v43  ;;  %v1815_v15 = vadd.f32 %v421_v0, %v420_v48  ;;  %v1817_v17 = vadd.f32 %v431_v1, %v430_v49  ;;  %v461_v19 = vrot.slane %v460_v3, 1  ;;  %v104_v42 = vld [vmem:[#allocation2 + $0x288] sm:$0xff]  ;;  %v105_v43 = vld [vmem:[#allocation2 + $0x290] sm:$0xff]  ;;  %v106_v49 = vld [vmem:[#allocation2 + $0x298] sm:$0xff] }
  0x2e   :  { %v1819_v18 = vadd.f32 %v441_v2, %v440_v50  ;;  %v1821_v23 = vadd.f32 %v451_v11, %v450_v58  ;;  %v471_v24 = vsel %vm463_vm0, %v67_v45, 0.0  ;;  %v479_v25 = vadd.f32 %v77_v54, %v68_v46  ;;  %v101_v48 = vld [vmem:[#allocation2 + $0x270] sm:$0xff]  ;;  %v107_v50 = vld [vmem:[#allocation2 + $0x2a0] sm:$0xff]  ;;  %v108_v54 = vld [vmem:[#allocation2 + $0x2a8] sm:$0xff] }
  0x2f   :  { %v489_v26 = vadd.f32 %v78_v61, %v69_v47  ;;  %v1824_v30 = vadd.f32 %v461_v19, %v460_v3  ;;  %v472_v31 = vadd.f32 %v471_v24, %v1807_v16  ;;  %v499_v32 = vadd.f32 %v79_v62, %v70_v52 }
  0x30   :  { %v509_v33 = vadd.f32 %v80_v63, %v71_v53  ;;  %v480_v37 = vadd.f32 %v479_v25, %v86_v12  ;;  %v519_v39 = vadd.f32 %v81_v5, %v72_v59  ;;  %v529_v40 = vadd.f32 %v82_v6, %v73_v60  ;;  %v110_v60 = vld [vmem:[#allocation2 + $0x2b8] sm:$0xff] }
  0x31   :  { %v490_v38 = vadd.f32 %v489_v26, %v87_v13  ;;  %v473_v44 = vrot.slane %v472_v31, 4  ;;  %v500_v45 = vadd.f32 %v499_v32, %v88_v14  ;;  %v539_v47 = vadd.f32 %v83_v7, %v74_v4 }
  0x32   :  { %v510_v46 = vadd.f32 %v509_v33, %v89_v20  ;;  %v481_v16 = vadd.f32 %v480_v37, %v95_v28  ;;  %v520_v52 = vadd.f32 %v519_v39, %v90_v21  ;;  %v530_v53 = vadd.f32 %v529_v40, %v91_v22  ;;  %v93_v40 = vld [vmem:[#allocation2 + $0x230] sm:$0xff] }
  0x33   :  { %v491_v51 = vadd.f32 %v490_v38, %v96_v29  ;;  %v474_v56 = vadd.f32 %v473_v44, %v472_v31  ;;  %v501_v57 = vadd.f32 %v500_v45, %v97_v34  ;;  %v540_v59 = vadd.f32 %v539_v47, %v92_v27  ;;  %v75_v29 = vld [vmem:[#allocation2 + $0x1a0] sm:$0xff]  ;;  %v84_v31 = vld [vmem:[#allocation2 + $0x1e8] sm:$0xff] }
  0x34   :  { %v511_v58 = vadd.f32 %v510_v46, %v98_v35  ;;  %v482_v61 = vadd.f32 %v481_v16, %v104_v42  ;;  %v521_v63 = vadd.f32 %v520_v52, %v99_v36  ;;  %v531_v0 = vadd.f32 %v530_v53, %v100_v41  ;;  %v76_v45 = vld [vmem:[#allocation2 + $0x1a8] sm:$0xff]  ;;  %v94_v16 = vld [vmem:[#allocation2 + $0x238] sm:$0xff] }
  0x35   :  { %v492_v62 = vadd.f32 %v491_v51, %v105_v43  ;;  %v475_v1 = vrot.slane %v474_v56, 2  ;;  %v502_v2 = vadd.f32 %v501_v57, %v106_v49  ;;  %v541_v4 = vadd.f32 %v540_v59, %v101_v48  ;;  %v102_v51 = vld [vmem:[#allocation2 + $0x278] sm:$0xff]  ;;  %v111_v57 = vld [vmem:[#allocation2 + $0x2c0] sm:$0xff]  ;;  %v113_v59 = vld [vmem:[#allocation2 + $0x2d0] sm:$0xff] }
  0x36   :  { %v512_v3 = vadd.f32 %v511_v58, %v107_v50  ;;  %v483_v5 = vrot.slane %v482_v61, 4  ;;  %v522_v7 = vadd.f32 %v521_v63, %v108_v54  ;;  %v532_v11 = vadd.f32 %v531_v0, %v109_v55  ;;  %v85_v50 = vld [vmem:[#allocation2 + $0x1f0] sm:$0xff]  ;;  %v112_v58 = vld [vmem:[#allocation2 + $0x2c8] sm:$0xff]  ;;  %v114_v0 = vld [vmem:[#allocation2 + $0x2d8] sm:$0xff] }
  0x37   :  { %v493_v6 = vrot.slane %v492_v62, 4  ;;  %v476_v12 = vadd.f32 %v475_v1, %v474_v56  ;;  %v503_v13 = vrot.slane %v502_v2, 4  ;;  %v542_v19 = vadd.f32 %v541_v4, %v110_v60  ;;  %v103_v56 = vld [vmem:[#allocation2 + $0x280] sm:$0xff] }
  0x38   :  { %v513_v14 = vrot.slane %v512_v3, 4  ;;  %v484_v20 = vadd.f32 %v483_v5, %v482_v61  ;;  %v523_v22 = vrot.slane %v522_v7, 4  ;;  %v533_v24 = vrot.slane %v532_v11, 4  ;;  %v115_v1 = vld [vmem:[#allocation2 + $0x2e0] sm:$0xff] }
  0x39   :  { %v494_v21 = vadd.f32 %v493_v6, %v492_v62  ;;  %v477_v25 = vrot.slane %v476_v12, 1  ;;  %v504_v26 = vadd.f32 %v503_v13, %v502_v2  ;;  %v543_v28 = vrot.slane %v542_v19, 4  ;;  %v116_v2 = vld [vmem:[#allocation2 + $0x2e8] sm:$0xff]  ;;  %v123_v13 = vld [vmem:[#allocation2 + $0x320] sm:$0xff] }
  0x3a   :  { %v514_v27 = vadd.f32 %v513_v14, %v512_v3  ;;  %v485_v32 = vrot.slane %v484_v20, 2  ;;  %v524_v34 = vadd.f32 %v523_v22, %v522_v7  ;;  %v534_v35 = vadd.f32 %v533_v24, %v532_v11  ;;  %v117_v7 = vld [vmem:[#allocation2 + $0x2f0] sm:$0xff]  ;;  %v118_v11 = vld [vmem:[#allocation2 + $0x2f8] sm:$0xff]  ;;  %v124_v22 = vld [vmem:[#allocation2 + $0x328] sm:$0xff] }
  0x3b   :  { %v495_v33 = vrot.slane %v494_v21, 2  ;;  %v1827_v36 = vadd.f32 %v477_v25, %v476_v12  ;;  %v505_v37 = vrot.slane %v504_v26, 2  ;;  %v544_v39 = vadd.f32 %v543_v28, %v542_v19  ;;  %v122_v12 = vld [vmem:[#allocation2 + $0x318] sm:$0xff]  ;;  %v125_v24 = vld [vmem:[#allocation2 + $0x330] sm:$0xff] }
  0x3c   :  { %v515_v38 = vrot.slane %v514_v27, 2  ;;  %v486_v41 = vadd.f32 %v485_v32, %v484_v20  ;;  %v525_v43 = vrot.slane %v524_v34, 2  ;;  %v535_v44 = vrot.slane %v534_v35, 2  ;;  %v126_v25 = vld [vmem:[#allocation2 + $0x338] sm:$0xff]  ;;  %v131_v32 = vld [vmem:[#allocation2 + $0x360] sm:$0xff] }
  0x3d   :  { %v496_v42 = vadd.f32 %v495_v33, %v494_v21  ;;  %v506_v46 = vadd.f32 %v505_v37, %v504_v26  ;;  %v545_v48 = vrot.slane %v544_v39, 2  ;;  %v549_v49 = vadd.f32 %v84_v31, %v75_v29  ;;  %v127_v31 = vld [vmem:[#allocation2 + $0x340] sm:$0xff]  ;;  %v132_v33 = vld [vmem:[#allocation2 + $0x368] sm:$0xff] }
  0x3e   :  { %v516_v47 = vadd.f32 %v515_v38, %v514_v27  ;;  %v487_v52 = vrot.slane %v486_v41, 1  ;;  %v526_v54 = vadd.f32 %v525_v43, %v524_v34  ;;  %v536_v55 = vadd.f32 %v535_v44, %v534_v35 }
  0x3f   :  { %v497_v53 = vrot.slane %v496_v42, 1  ;;  %v507_v60 = vrot.slane %v506_v46, 1  ;;  %v546_v62 = vadd.f32 %v545_v48, %v544_v39  ;;  %v550_v63 = vadd.f32 %v549_v49, %v93_v40  ;;  %v133_v39 = vld [vmem:[#allocation2 + $0x370] sm:$0xff]  ;;  %v134_v40 = vld [vmem:[#allocation2 + $0x378] sm:$0xff] }
  0x40   :  { %v517_v61 = vrot.slane %v516_v47, 1  ;;  %v1829_v3 = vadd.f32 %v487_v52, %v486_v41  ;;  %v527_v5 = vrot.slane %v526_v54, 1  ;;  %v537_v6 = vrot.slane %v536_v55, 1  ;;  %v135_v41 = vld [vmem:[#allocation2 + $0x380] sm:$0xff]  ;;  %v141_v48 = vld [vmem:[#allocation2 + $0x3b0] sm:$0xff] }
  0x41   :  { %v1831_v4 = vadd.f32 %v497_v53, %v496_v42  ;;  %v1833_v14 = vadd.f32 %v507_v60, %v506_v46  ;;  %v547_v20 = vrot.slane %v546_v62, 1  ;;  %v551_v21 = vadd.f32 %v550_v63, %v102_v51  ;;  %v136_v46 = vld [vmem:[#allocation2 + $0x388] sm:$0xff]  ;;  %v142_v53 = vld [vmem:[#allocation2 + $0x3b8] sm:$0xff] }
  0x42   :  { %v1835_v19 = vadd.f32 %v517_v61, %v516_v47  ;;  %v1837_v26 = vadd.f32 %v527_v5, %v526_v54  ;;  %v1839_v27 = vadd.f32 %v537_v6, %v536_v55  ;;  %v559_v28 = vsel %vm463_vm0, %v76_v45, 0.0  ;;  %v140_v47 = vld [vmem:[#allocation2 + $0x3a8] sm:$0xff]  ;;  %v143_v54 = vld [vmem:[#allocation2 + $0x3c0] sm:$0xff]  ;;  %v150_v63 = vld [vmem:[#allocation2 + $0x3f8] sm:$0xff] }
  0x43   :  { %v560_v29 = vsel %vm463_vm0, %v85_v50, 0.0  ;;  %v1843_v34 = vadd.f32 %v547_v20, %v546_v62  ;;  %v552_v35 = vadd.f32 %v551_v21, %v111_v57  ;;  %v562_v38 = vsel %vm463_vm0, %v94_v16, 0.0  ;;  %v144_v55 = vld [vmem:[#allocation2 + $0x3c8] sm:$0xff]  ;;  %v145_v62 = vld [vmem:[#allocation2 + $0x3d0] sm:$0xff]  ;;  %v151_v6 = vld [vmem:[#allocation2 + $0x400] sm:$0xff] }
  0x44   :  { %v561_v37 = vadd.f32 %v560_v29, %v559_v28  ;;  %v564_v42 = vsel %vm463_vm0, %v103_v56, 0.0  ;;  %v566_v43 = vsel %vm463_vm0, %v112_v58, 0.0  ;;  %v574_v44 = vadd.f32 %v122_v12, %v113_v59  ;;  %v149_v56 = vld [vmem:[#allocation2 + $0x3f0] sm:$0xff]  ;;  %v152_v12 = vld [vmem:[#allocation2 + $0x408] sm:$0xff] }
  0x45   :  { %v584_v45 = vadd.f32 %v123_v13, %v114_v0  ;;  %v553_v49 = vrot.slane %v552_v35, 4  ;;  %v594_v51 = vadd.f32 %v124_v22, %v115_v1  ;;  %v604_v52 = vadd.f32 %v125_v24, %v116_v2  ;;  %v153_v21 = vld [vmem:[#allocation2 + $0x410] sm:$0xff]  ;;  %v154_v22 = vld [vmem:[#allocation2 + $0x418] sm:$0xff] }
  0x46   :  { %v563_v50 = vadd.f32 %v562_v38, %v561_v37  ;;  %v575_v16 = vadd.f32 %v574_v44, %v131_v32  ;;  %v614_v60 = vadd.f32 %v126_v25, %v117_v7  ;;  %v624_v61 = vadd.f32 %v127_v31, %v118_v11 }
  0x47   :  { %v585_v57 = vadd.f32 %v584_v45, %v132_v33  ;;  %v554_v58 = vadd.f32 %v553_v49, %v552_v35  ;;  %v595_v0 = vadd.f32 %v594_v51, %v133_v39  ;;  %v605_v5 = vadd.f32 %v604_v52, %v134_v40 }
  0x48   :  { %v565_v59 = vadd.f32 %v564_v42, %v563_v50  ;;  %v576_v13 = vadd.f32 %v575_v16, %v140_v47  ;;  %v615_v1 = vadd.f32 %v614_v60, %v135_v41  ;;  %v625_v2 = vadd.f32 %v624_v61, %v136_v46 }
  0x49   :  { %v586_v20 = vadd.f32 %v585_v57, %v141_v48  ;;  %v555_v24 = vrot.slane %v554_v58, 2  ;;  %v596_v29 = vadd.f32 %v595_v0, %v142_v53  ;;  %v606_v7 = vadd.f32 %v605_v5, %v143_v54  ;;  %v119_v48 = vld [vmem:[#allocation2 + $0x300] sm:$0xff]  ;;  %v137_v57 = vld [vmem:[#allocation2 + $0x390] sm:$0xff]  ;;  %v146_v5 = vld [vmem:[#allocation2 + $0x3d8] sm:$0xff] }
  0x4a   :  { %v567_v28 = vadd.f32 %v566_v43, %v565_v59  ;;  %v577_v11 = vadd.f32 %v576_v13, %v149_v56  ;;  %v616_v31 = vadd.f32 %v615_v1, %v144_v55  ;;  %v626_v32 = vadd.f32 %v625_v2, %v145_v62  ;;  %v128_v43 = vld [vmem:[#allocation2 + $0x348] sm:$0xff]  ;;  %v121_v2 = vld [vmem:[#allocation2 + $0x310] sm:$0xff] }
  0x4b   :  { %v587_v25 = vadd.f32 %v586_v20, %v150_v63  ;;  %v556_v33 = vadd.f32 %v555_v24, %v554_v58  ;;  %v597_v37 = vadd.f32 %v596_v29, %v151_v6  ;;  %v607_v38 = vadd.f32 %v606_v7, %v152_v12  ;;  %v120_v1 = vld [vmem:[#allocation2 + $0x308] sm:$0xff]  ;;  %v130_v7 = vld [vmem:[#allocation2 + $0x358] sm:$0xff] }
  0x4c   :  { %v568_v35 = vrot.slane %v567_v28, 4  ;;  %v578_v39 = vrot.slane %v577_v11, 4  ;;  %v617_v42 = vadd.f32 %v616_v31, %v153_v21  ;;  %v627_v44 = vadd.f32 %v626_v32, %v154_v22  ;;  %v129_v21 = vld [vmem:[#allocation2 + $0x350] sm:$0xff] }
  0x4d   :  { %v588_v40 = vrot.slane %v587_v25, 4  ;;  %v557_v41 = vrot.slane %v556_v33, 1  ;;  %v598_v46 = vrot.slane %v597_v37, 4  ;;  %v608_v47 = vrot.slane %v607_v38, 4 }
  0x4e   :  { %v569_v45 = vadd.f32 %v568_v35, %v567_v28  ;;  %v579_v49 = vadd.f32 %v578_v39, %v577_v11  ;;  %v618_v51 = vrot.slane %v617_v42, 4  ;;  %v628_v52 = vrot.slane %v627_v44, 4  ;;  %v138_v11 = vld [vmem:[#allocation2 + $0x398] sm:$0xff]  ;;  %v157_v39 = vld [vmem:[#allocation2 + $0x430] sm:$0xff] }
  0x4f   :  { %v589_v50 = vadd.f32 %v588_v40, %v587_v25  ;;  %v1848_v53 = vadd.f32 %v557_v41, %v556_v33  ;;  %v599_v55 = vadd.f32 %v598_v46, %v597_v37  ;;  %v609_v16 = vadd.f32 %v608_v47, %v607_v38  ;;  %v155_v25 = vld [vmem:[#allocation2 + $0x420] sm:$0xff]  ;;  %v148_v38 = vld [vmem:[#allocation2 + $0x3e8] sm:$0xff]  ;;  %v158_v46 = vld [vmem:[#allocation2 + $0x438] sm:$0xff] }
  0x50   :  { %v570_v54 = vrot.slane %v569_v45, 2  ;;  %v580_v60 = vrot.slane %v579_v49, 2  ;;  %v619_v62 = vadd.f32 %v618_v51, %v617_v42  ;;  %v629_v56 = vadd.f32 %v628_v52, %v627_v44  ;;  %v139_v37 = vld [vmem:[#allocation2 + $0x3a0] sm:$0xff]  ;;  %v161_v52 = vld [vmem:[#allocation2 + $0x450] sm:$0xff] }
  0x51   :  { %v590_v61 = vrot.slane %v589_v50, 2  ;;  %v600_v58 = vrot.slane %v599_v55, 2  ;;  %v610_v59 = vrot.slane %v609_v16, 2  ;;  %v634_v0 = vadd.f32 %v128_v43, %v119_v48  ;;  %v159_v47 = vld [vmem:[#allocation2 + $0x440] sm:$0xff]  ;;  %v160_v48 = vld [vmem:[#allocation2 + $0x448] sm:$0xff] }
  0x52   :  { %v571_v63 = vadd.f32 %v570_v54, %v569_v45  ;;  %v581_v6 = vadd.f32 %v580_v60, %v579_v49  ;;  %v620_v13 = vrot.slane %v619_v62, 2  ;;  %v630_v20 = vrot.slane %v629_v56, 2  ;;  %v147_v45 = vld [vmem:[#allocation2 + $0x3e0] sm:$0xff] }
  0x53   :  { %v591_v12 = vadd.f32 %v590_v61, %v589_v50  ;;  %v601_v24 = vadd.f32 %v600_v58, %v599_v55  ;;  %v611_v28 = vadd.f32 %v610_v59, %v609_v16  ;;  %v635_v29 = vadd.f32 %v634_v0, %v137_v57  ;;  %v167_v54 = vld [vmem:[#allocation2 + $0x480] sm:$0xff]  ;;  %v168_v55 = vld [vmem:[#allocation2 + $0x488] sm:$0xff] }
  0x54   :  { %v572_v22 = vrot.slane %v571_v63, 1  ;;  %v582_v31 = vrot.slane %v581_v6, 1  ;;  %v621_v33 = vadd.f32 %v620_v13, %v619_v62  ;;  %v631_v35 = vadd.f32 %v630_v20, %v629_v56  ;;  %v162_v62 = vld [vmem:[#allocation2 + $0x458] sm:$0xff]  ;;  %v169_v56 = vld [vmem:[#allocation2 + $0x490] sm:$0xff] }
  0x55   :  { %v592_v32 = vrot.slane %v591_v12, 1  ;;  %v602_v42 = vrot.slane %v601_v24, 1  ;;  %v612_v44 = vrot.slane %v611_v28, 1  ;;  %v636_v41 = vadd.f32 %v635_v29, %v146_v5  ;;  %v177_v13 = vld [vmem:[#allocation2 + $0x4d0] sm:$0xff]  ;;  %v179_v29 = vld [vmem:[#allocation2 + $0x4e0] sm:$0xff] }
  0x56   :  { %v1850_v40 = vadd.f32 %v572_v22, %v571_v63  ;;  %v1852_v43 = vadd.f32 %v582_v31, %v581_v6  ;;  %v622_v50 = vrot.slane %v621_v33, 1  ;;  %v632_v51 = vrot.slane %v631_v35, 1  ;;  %v170_v63 = vld [vmem:[#allocation2 + $0x498] sm:$0xff]  ;;  %v171_v6 = vld [vmem:[#allocation2 + $0x4a0] sm:$0xff] }
  0x57   :  { %v1854_v49 = vadd.f32 %v592_v32, %v591_v12  ;;  %v1856_v16 = vadd.f32 %v602_v42, %v601_v24  ;;  %v1858_v57 = vadd.f32 %v612_v44, %v611_v28  ;;  %v637_v60 = vadd.f32 %v636_v41, %v155_v25  ;;  %v176_v12 = vld [vmem:[#allocation2 + $0x4c8] sm:$0xff] }
  0x58   :  { %v644_v61 = vadd.f32 %v129_v21, %v120_v1  ;;  %v1860_v58 = vadd.f32 %v622_v50, %v621_v33  ;;  %v1862_v59 = vadd.f32 %v632_v51, %v631_v35  ;;  %v654_v0 = vsel %vm463_vm0, %v121_v2, 0.0  ;;  %v156_v1 = vld [vmem:[#allocation2 + $0x428] sm:$0xff]  ;;  %v178_v21 = vld [vmem:[#allocation2 + $0x4d8] sm:$0xff]  ;;  %v185_v35 = vld [vmem:[#allocation2 + $0x510] sm:$0xff] }
  0x59   :  { %2437 = vst [vmem:[#allocation8_spill] sm:$0xff] %v1856_v16  ;;  %2438 = vst [vmem:[#allocation9_spill] sm:$0xff] %v1858_v57  ;;  %v655_v5 = vsel %vm463_vm0, %v130_v7, 0.0  ;;  %v638_v20 = vrot.slane %v637_v60, 4  ;;  %v657_v28 = vsel %vm463_vm0, %v139_v37, 0.0  ;;  %v659_v25 = vsel %vm463_vm0, %v148_v38, 0.0 }
  0x5a   :  { %2439 = vst [vmem:[#allocation10_spill] sm:$0xff] %v1860_v58  ;;  %2440 = vst [vmem:[#allocation11_spill] sm:$0xff] %v1862_v59  ;;  %v645_v22 = vadd.f32 %v644_v61, %v138_v11  ;;  %v656_v24 = vadd.f32 %v655_v5, %v654_v0  ;;  %v661_v31 = vsel %vm463_vm0, %v157_v39, 0.0  ;;  %v669_v32 = vadd.f32 %v167_v54, %v158_v46  ;;  %v180_v2 = vld [vmem:[#allocation2 + $0x4e8] sm:$0xff]  ;;  %v186_v7 = vld [vmem:[#allocation2 + $0x518] sm:$0xff] }
  0x5b   :  { %v679_v33 = vadd.f32 %v168_v55, %v159_v47  ;;  %v639_v42 = vadd.f32 %v638_v20, %v637_v60  ;;  %v689_v50 = vadd.f32 %v169_v56, %v160_v48  ;;  %v187_v11 = vld [vmem:[#allocation2 + $0x520] sm:$0xff]  ;;  %v188_v51 = vld [vmem:[#allocation2 + $0x528] sm:$0xff]  ;;  %v699_v0 = vadd.f32 %v170_v63, %v161_v52  ;;  %v189_v59 = vld [vmem:[#allocation2 + $0x530] sm:$0xff] }
  0x5c   :  { %v646_v44 = vadd.f32 %v645_v22, %v147_v45  ;;  %v658_v41 = vadd.f32 %v657_v28, %v656_v24  ;;  %v670_v61 = vadd.f32 %v669_v32, %v176_v12  ;;  %v709_v5 = vadd.f32 %v171_v6, %v162_v62  ;;  %v194_v58 = vld [vmem:[#allocation2 + $0x558] sm:$0xff]  ;;  %v195_v38 = vld [vmem:[#allocation2 + $0x560] sm:$0xff]  ;;  %v196_v54 = vld [vmem:[#allocation2 + $0x568] sm:$0xff] }
  0x5d   :  { %v680_v37 = vadd.f32 %v679_v33, %v177_v13  ;;  %v640_v57 = vrot.slane %v639_v42, 2  ;;  %v690_v47 = vadd.f32 %v689_v50, %v178_v21  ;;  %v700_v60 = vadd.f32 %v699_v0, %v179_v29  ;;  %v197_v20 = vld [vmem:[#allocation2 + $0x570] sm:$0xff]  ;;  %v198_v48 = vld [vmem:[#allocation2 + $0x578] sm:$0xff]  ;;  %v163_v21 = vld [vmem:[#allocation2 + $0x460] sm:$0xff] }
  0x5e   :  { %v647_v39 = vadd.f32 %v646_v44, %v156_v1  ;;  %v660_v46 = vadd.f32 %v659_v25, %v658_v41  ;;  %v671_v55 = vadd.f32 %v670_v61, %v185_v35  ;;  %v710_v45 = vadd.f32 %v709_v5, %v180_v2  ;;  %v172_v32 = vld [vmem:[#allocation2 + $0x4a8] sm:$0xff]  ;;  %v181_v44 = vld [vmem:[#allocation2 + $0x4f0] sm:$0xff] }
  0x5f   :  { %v681_v16 = vadd.f32 %v680_v37, %v186_v7  ;;  %v641_v56 = vadd.f32 %v640_v57, %v639_v42  ;;  %v691_v13 = vadd.f32 %v690_v47, %v187_v11  ;;  %v701_v63 = vadd.f32 %v700_v60, %v188_v51  ;;  %v190_v37 = vld [vmem:[#allocation2 + $0x538] sm:$0xff]  ;;  %v164_v60 = vld [vmem:[#allocation2 + $0x468] sm:$0xff] }
  0x60   :  { %v648_v22 = vrot.slane %v647_v39, 4  ;;  %v662_v12 = vadd.f32 %v661_v31, %v660_v46  ;;  %v672_v52 = vadd.f32 %v671_v55, %v194_v58  ;;  %v711_v6 = vadd.f32 %v710_v45, %v189_v59  ;;  %v173_v45 = vld [vmem:[#allocation2 + $0x4b0] sm:$0xff] }
  0x61   :  { %v682_v62 = vadd.f32 %v681_v16, %v195_v38  ;;  %v642_v24 = vrot.slane %v641_v56, 1  ;;  %v692_v25 = vadd.f32 %v691_v13, %v196_v54  ;;  %v702_v29 = vadd.f32 %v701_v63, %v197_v20  ;;  %v199_v20 = vld [vmem:[#allocation2 + $0x580] sm:$0xff]  ;;  %v165_v13 = vld [vmem:[#allocation2 + $0x470] sm:$0xff] }
  0x62   :  { %v649_v28 = vadd.f32 %v648_v22, %v647_v39  ;;  %v663_v1 = vrot.slane %v662_v12, 4  ;;  %v673_v33 = vrot.slane %v672_v52, 4  ;;  %v712_v2 = vadd.f32 %v711_v6, %v198_v48 }
  0x63   :  { %v683_v35 = vrot.slane %v682_v62, 4  ;;  %v1869_v7 = vadd.f32 %v642_v24, %v641_v56  ;;  %v693_v31 = vrot.slane %v692_v25, 4  ;;  %v703_v41 = vrot.slane %v702_v29, 4 }
  0x64   :  { %v650_v57 = vrot.slane %v649_v28, 2  ;;  %v664_v42 = vadd.f32 %v663_v1, %v662_v12  ;;  %v674_v58 = vadd.f32 %v673_v33, %v672_v52  ;;  %v713_v59 = vrot.slane %v712_v2, 4  ;;  %v166_v52 = vld [vmem:[#allocation2 + $0x478] sm:$0xff]  ;;  %v175_v1 = vld [vmem:[#allocation2 + $0x4c0] sm:$0xff] }
  0x65   :  { %v684_v16 = vadd.f32 %v683_v35, %v682_v62  ;;  %v694_v51 = vadd.f32 %v693_v31, %v692_v25  ;;  %v719_v61 = vadd.f32 %v172_v32, %v163_v21  ;;  %v704_v38 = vadd.f32 %v703_v41, %v702_v29  ;;  %v182_v25 = vld [vmem:[#allocation2 + $0x4f8] sm:$0xff]  ;;  %v183_v29 = vld [vmem:[#allocation2 + $0x500] sm:$0xff]  ;;  %v193_v41 = vld [vmem:[#allocation2 + $0x550] sm:$0xff] }
  0x66   :  { %v651_v50 = vadd.f32 %v650_v57, %v649_v28  ;;  %v665_v11 = vrot.slane %v664_v42, 2  ;;  %v675_v0 = vrot.slane %v674_v58, 2  ;;  %v714_v39 = vadd.f32 %v713_v59, %v712_v2  ;;  %v174_v28 = vld [vmem:[#allocation2 + $0x4b8] sm:$0xff]  ;;  %v184_v2 = vld [vmem:[#allocation2 + $0x508] sm:$0xff]  ;;  %v191_v57 = vld [vmem:[#allocation2 + $0x540] sm:$0xff] }
  0x67   :  { %v685_v5 = vrot.slane %v684_v16, 2  ;;  %v695_v54 = vrot.slane %v694_v51, 2  ;;  %v720_v55 = vadd.f32 %v719_v61, %v181_v44  ;;  %v705_v22 = vrot.slane %v704_v38, 2  ;;  %v200_v59 = vld [vmem:[#allocation2 + $0x588] sm:$0xff] }
  0x68   :  { %v652_v46 = vrot.slane %v651_v50, 1  ;;  %v666_v47 = vadd.f32 %v665_v11, %v664_v42  ;;  %v676_v48 = vadd.f32 %v675_v0, %v674_v58  ;;  %v715_v12 = vrot.slane %v714_v39, 2  ;;  %v203_v0 = vld [vmem:[#allocation2 + $0x5a0] sm:$0xff] }
  0x69   :  { %v686_v56 = vadd.f32 %v685_v5, %v684_v16  ;;  %v696_v6 = vadd.f32 %v695_v54, %v694_v51  ;;  %v721_v24 = vadd.f32 %v720_v55, %v190_v37  ;;  %v706_v33 = vadd.f32 %v705_v22, %v704_v38  ;;  %v192_v16 = vld [vmem:[#allocation2 + $0x548] sm:$0xff]  ;;  %v205_v55 = vld [vmem:[#allocation2 + $0x5b0] sm:$0xff] }
  0x6a   :  { %v1871_v62 = vadd.f32 %v652_v46, %v651_v50  ;;  %v667_v63 = vrot.slane %v666_v47, 1  ;;  %v677_v21 = vrot.slane %v676_v48, 1  ;;  %v716_v35 = vadd.f32 %v715_v12, %v714_v39  ;;  %v202_v50 = vld [vmem:[#allocation2 + $0x598] sm:$0xff]  ;;  %v204_v5 = vld [vmem:[#allocation2 + $0x5a8] sm:$0xff] }
  0x6b   :  { %v687_v32 = vrot.slane %v686_v56, 1  ;;  %v697_v31 = vrot.slane %v696_v6, 1  ;;  %v722_v44 = vadd.f32 %v721_v24, %v199_v20  ;;  %v729_v58 = vadd.f32 %v173_v45, %v164_v60  ;;  %v212_v38 = vld [vmem:[#allocation2 + $0x5e8] sm:$0xff]  ;;  %v206_v60 = vld [vmem:[#allocation2 + $0x5b8] sm:$0xff]  ;;  %v213_v45 = vld [vmem:[#allocation2 + $0x5f0] sm:$0xff] }
  0x6c   :  { %2441 = vst [vmem:[#allocation12_spill] sm:$0xff] %v1871_v62  ;;  %v1873_v42 = vadd.f32 %v667_v63, %v666_v47  ;;  %v1875_v11 = vadd.f32 %v677_v21, %v676_v48  ;;  %v707_v61 = vrot.slane %v706_v33, 1  ;;  %v717_v37 = vrot.slane %v716_v35, 1  ;;  %v214_v12 = vld [vmem:[#allocation2 + $0x5f8] sm:$0xff]  ;;  %v215_v63 = vld [vmem:[#allocation2 + $0x600] sm:$0xff]  ;;  %v221_v24 = vld [vmem:[#allocation2 + $0x630] sm:$0xff] }
  0x6d   :  { %v1877_v51 = vadd.f32 %v687_v32, %v686_v56  ;;  %v1879_v39 = vadd.f32 %v697_v31, %v696_v6  ;;  %v723_v46 = vrot.slane %v722_v44, 4  ;;  %v730_v47 = vadd.f32 %v729_v58, %v182_v25  ;;  %v201_v25 = vld [vmem:[#allocation2 + $0x590] sm:$0xff]  ;;  %v240_v62 = vld [vmem:[#allocation2 + $0x6c8] sm:$0xff] }
  0x6e   :  { %2442 = vst [vmem:[#allocation13_spill] sm:$0xff] %v1873_v42  ;;  %2443 = vst [vmem:[#allocation14_spill] sm:$0xff] %v1875_v11  ;;  %v739_v54 = vadd.f32 %v174_v28, %v165_v13  ;;  %v1881_v20 = vadd.f32 %v707_v61, %v706_v33  ;;  %v1883_v22 = vadd.f32 %v717_v37, %v716_v35  ;;  %v749_v48 = vsel %vm463_vm0, %v166_v52, 0.0  ;;  %v222_v13 = vld [vmem:[#allocation2 + $0x638] sm:$0xff]  ;;  %v223_v61 = vld [vmem:[#allocation2 + $0x640] sm:$0xff] }
  0x6f   :  { %2444 = vst [vmem:[#allocation15_spill] sm:$0xff] %v1877_v51  ;;  %2445 = vst [vmem:[#allocation16_spill] sm:$0xff] %v1879_v39  ;;  %v750_v56 = vsel %vm463_vm0, %v175_v1, 0.0  ;;  %v724_v21 = vadd.f32 %v723_v46, %v722_v44  ;;  %v731_v6 = vadd.f32 %v730_v47, %v191_v57  ;;  %v752_v28 = vsel %vm463_vm0, %v184_v2, 0.0  ;;  %v224_v52 = vld [vmem:[#allocation2 + $0x648] sm:$0xff]  ;;  %v230_v37 = vld [vmem:[#allocation2 + $0x678] sm:$0xff] }
  0x70   :  { %2446 = vst [vmem:[#allocation17_spill] sm:$0xff] %v1881_v20  ;;  %2447 = vst [vmem:[#allocation18_spill] sm:$0xff] %v1883_v22  ;;  %v740_v32 = vadd.f32 %v739_v54, %v183_v29  ;;  %v751_v31 = vadd.f32 %v750_v56, %v749_v48  ;;  %v754_v33 = vsel %vm463_vm0, %v193_v41, 0.0  ;;  %v756_v35 = vsel %vm463_vm0, %v202_v50, 0.0  ;;  %v231_v44 = vld [vmem:[#allocation2 + $0x680] sm:$0xff]  ;;  %v232_v54 = vld [vmem:[#allocation2 + $0x688] sm:$0xff] }
  0x71   :  { %v764_v58 = vadd.f32 %v212_v38, %v203_v0  ;;  %v725_v1 = vrot.slane %v724_v21, 2  ;;  %v732_v22 = vadd.f32 %v731_v6, %v200_v59  ;;  %v774_v29 = vadd.f32 %v213_v45, %v204_v5  ;;  %v233_v48 = vld [vmem:[#allocation2 + $0x690] sm:$0xff]  ;;  %v239_v2 = vld [vmem:[#allocation2 + $0x6c0] sm:$0xff] }
  0x72   :  { %v741_v20 = vadd.f32 %v740_v32, %v192_v16  ;;  %v753_v39 = vadd.f32 %v752_v28, %v751_v31  ;;  %v784_v46 = vadd.f32 %v214_v12, %v205_v55  ;;  %v794_v47 = vadd.f32 %v215_v63, %v206_v60  ;;  %v241_v59 = vld [vmem:[#allocation2 + $0x6d0] sm:$0xff]  ;;  %v242_v16 = vld [vmem:[#allocation2 + $0x6d8] sm:$0xff]  ;;  %v207_v55 = vld [vmem:[#allocation2 + $0x5c0] sm:$0xff] }
  0x73   :  { %v765_v57 = vadd.f32 %v764_v58, %v221_v24  ;;  %v726_v56 = vadd.f32 %v725_v1, %v724_v21  ;;  %v733_v41 = vrot.slane %v732_v22, 4  ;;  %v775_v38 = vadd.f32 %v774_v29, %v222_v13  ;;  %v216_v60 = vld [vmem:[#allocation2 + $0x608] sm:$0xff]  ;;  %v225_v13 = vld [vmem:[#allocation2 + $0x650] sm:$0xff]  ;;  %v234_v1 = vld [vmem:[#allocation2 + $0x698] sm:$0xff] }
  0x74   :  { %v742_v51 = vadd.f32 %v741_v20, %v201_v25  ;;  %v755_v50 = vadd.f32 %v754_v33, %v753_v39  ;;  %v785_v11 = vadd.f32 %v784_v46, %v223_v61  ;;  %v795_v42 = vadd.f32 %v794_v47, %v224_v52 }
  0x75   :  { %v766_v0 = vadd.f32 %v765_v57, %v230_v37  ;;  %v727_v6 = vrot.slane %v726_v56, 1  ;;  %v734_v32 = vadd.f32 %v733_v41, %v732_v22  ;;  %v776_v12 = vadd.f32 %v775_v38, %v231_v44 }
  0x76   :  { %v743_v24 = vrot.slane %v742_v51, 4  ;;  %v757_v5 = vadd.f32 %v756_v35, %v755_v50  ;;  %v786_v63 = vadd.f32 %v785_v11, %v232_v54  ;;  %v796_v21 = vadd.f32 %v795_v42, %v233_v48  ;;  %v217_v48 = vld [vmem:[#allocation2 + $0x610] sm:$0xff] }
  0x77   :  { %v767_v45 = vadd.f32 %v766_v0, %v239_v2  ;;  %v1890_v31 = vadd.f32 %v727_v6, %v726_v56  ;;  %v735_v39 = vrot.slane %v734_v32, 2  ;;  %v777_v33 = vadd.f32 %v776_v12, %v240_v62  ;;  %v243_v2 = vld [vmem:[#allocation2 + $0x6e0] sm:$0xff]  ;;  %v209_v6 = vld [vmem:[#allocation2 + $0x5d0] sm:$0xff]  ;;  %v210_v12 = vld [vmem:[#allocation2 + $0x5d8] sm:$0xff] }
  0x78   :  { %v744_v20 = vadd.f32 %v743_v24, %v742_v51  ;;  %v758_v25 = vrot.slane %v757_v5, 4  ;;  %v787_v58 = vadd.f32 %v786_v63, %v241_v59  ;;  %v797_v61 = vadd.f32 %v796_v21, %v242_v16  ;;  %v208_v51 = vld [vmem:[#allocation2 + $0x5c8] sm:$0xff]  ;;  %v226_v24 = vld [vmem:[#allocation2 + $0x658] sm:$0xff] }
  0x79   :  { %v768_v28 = vrot.slane %v767_v45, 4  ;;  %v736_v52 = vadd.f32 %v735_v39, %v734_v32  ;;  %v804_v35 = vadd.f32 %v216_v60, %v207_v55  ;;  %v778_v29 = vrot.slane %v777_v33, 4  ;;  %v218_v32 = vld [vmem:[#allocation2 + $0x618] sm:$0xff] }
  0x7a   :  { %v745_v22 = vrot.slane %v744_v20, 2  ;;  %v759_v37 = vadd.f32 %v758_v25, %v757_v5  ;;  %v788_v44 = vrot.slane %v787_v58, 4  ;;  %v798_v11 = vrot.slane %v797_v61, 4  ;;  %v219_v25 = vld [vmem:[#allocation2 + $0x620] sm:$0xff] }
  0x7b   :  { %v769_v57 = vadd.f32 %v768_v28, %v767_v45  ;;  %v737_v42 = vrot.slane %v736_v52, 1  ;;  %v805_v54 = vadd.f32 %v804_v35, %v225_v13  ;;  %v779_v62 = vadd.f32 %v778_v29, %v777_v33  ;;  %v227_v13 = vld [vmem:[#allocation2 + $0x660] sm:$0xff]  ;;  %v228_v35 = vld [vmem:[#allocation2 + $0x668] sm:$0xff] }
  0x7c   :  { %v746_v46 = vadd.f32 %v745_v22, %v744_v20  ;;  %v760_v47 = vrot.slane %v759_v37, 2  ;;  %v789_v41 = vadd.f32 %v788_v44, %v787_v58  ;;  %v799_v50 = vadd.f32 %v798_v11, %v797_v61  ;;  %v235_v28 = vld [vmem:[#allocation2 + $0x6a0] sm:$0xff]  ;;  %v229_v11 = vld [vmem:[#allocation2 + $0x670] sm:$0xff] }
  0x7d   :  { %v770_v56 = vrot.slane %v769_v57, 2  ;;  %v1892_v0 = vadd.f32 %v737_v42, %v736_v52  ;;  %v806_v16 = vadd.f32 %v805_v54, %v234_v1  ;;  %v780_v55 = vrot.slane %v779_v62, 2  ;;  %v211_v22 = vld [vmem:[#allocation2 + $0x5e0] sm:$0xff]  ;;  %v236_v42 = vld [vmem:[#allocation2 + $0x6a8] sm:$0xff] }
  0x7e   :  { %v747_v38 = vrot.slane %v746_v46, 1  ;;  %v761_v59 = vadd.f32 %v760_v47, %v759_v37  ;;  %v790_v60 = vrot.slane %v789_v41, 2  ;;  %v800_v45 = vrot.slane %v799_v50, 2  ;;  %v220_v37 = vld [vmem:[#allocation2 + $0x628] sm:$0xff] }
  0x7f   :  { %v771_v5 = vadd.f32 %v770_v56, %v769_v57  ;;  %v807_v39 = vadd.f32 %v806_v16, %v243_v2  ;;  %v814_v20 = vadd.f32 %v217_v48, %v208_v51  ;;  %v781_v58 = vadd.f32 %v780_v55, %v779_v62  ;;  %v238_v2 = vld [vmem:[#allocation2 + $0x6b8] sm:$0xff]  ;;  %v248_v56 = vld [vmem:[#allocation2 + $0x708] sm:$0xff]  ;;  %v257_v62 = vld [vmem:[#allocation2 + $0x750] sm:$0xff] }
  0x80   :  { %v1894_v63 = vadd.f32 %v747_v38, %v746_v46  ;;  %v762_v21 = vrot.slane %v761_v59, 1  ;;  %v791_v61 = vadd.f32 %v790_v60, %v789_v41  ;;  %v801_v52 = vadd.f32 %v800_v45, %v799_v50  ;;  %v244_v46 = vld [vmem:[#allocation2 + $0x6e8] sm:$0xff]  ;;  %v245_v55 = vld [vmem:[#allocation2 + $0x6f0] sm:$0xff]  ;;  %v247_v60 = vld [vmem:[#allocation2 + $0x700] sm:$0xff] }
  0x81   :  { %v772_v33 = vrot.slane %v771_v5, 1  ;;  %v808_v57 = vrot.slane %v807_v39, 4  ;;  %v815_v29 = vadd.f32 %v814_v20, %v226_v24  ;;  %v824_v44 = vadd.f32 %v218_v32, %v209_v6  ;;  %v249_v45 = vld [vmem:[#allocation2 + $0x710] sm:$0xff]  ;;  %v266_v20 = vld [vmem:[#allocation2 + $0x798] sm:$0xff] }
  0x82   :  { %2448 = vst [vmem:[#allocation19_spill] sm:$0xff] %v1894_v63  ;;  %v1896_v1 = vadd.f32 %v762_v21, %v761_v59  ;;  %v782_v54 = vrot.slane %v781_v58, 1  ;;  %v792_v51 = vrot.slane %v791_v61, 1  ;;  %v802_v48 = vrot.slane %v801_v52, 1  ;;  %v237_v59 = vld [vmem:[#allocation2 + $0x6b0] sm:$0xff]  ;;  %v258_v21 = vld [vmem:[#allocation2 + $0x758] sm:$0xff] }
  0x83   :  { %v1898_v47 = vadd.f32 %v772_v33, %v771_v5  ;;  %v809_v41 = vadd.f32 %v808_v57, %v807_v39  ;;  %v816_v50 = vadd.f32 %v815_v29, %v235_v28  ;;  %v825_v38 = vadd.f32 %v824_v44, %v227_v13  ;;  %v246_v13 = vld [vmem:[#allocation2 + $0x6f8] sm:$0xff]  ;;  %v267_v29 = vld [vmem:[#allocation2 + $0x7a0] sm:$0xff] }
  0x84   :  { %2449 = vst [vmem:[#allocation20_spill] sm:$0xff] %v1896_v1  ;;  %v834_v16 = vadd.f32 %v219_v25, %v210_v12  ;;  %v1900_v24 = vadd.f32 %v782_v54, %v781_v58  ;;  %v1902_v6 = vadd.f32 %v792_v51, %v791_v61  ;;  %v1904_v32 = vadd.f32 %v802_v48, %v801_v52  ;;  %v250_v12 = vld [vmem:[#allocation2 + $0x718] sm:$0xff]  ;;  %v259_v52 = vld [vmem:[#allocation2 + $0x760] sm:$0xff] }
  0x85   :  { %2450 = vst [vmem:[#allocation21_spill] sm:$0xff] %v1898_v47  ;;  %v844_v5 = vsel %vm463_vm0, %v211_v22, 0.0  ;;  %v810_v33 = vrot.slane %v809_v41, 2  ;;  %v817_v47 = vadd.f32 %v816_v50, %v244_v46  ;;  %v826_v39 = vadd.f32 %v825_v38, %v236_v42  ;;  %v275_v44 = vld [vmem:[#allocation2 + $0x7e0] sm:$0xff]  ;;  %v268_v50 = vld [vmem:[#allocation2 + $0x7a8] sm:$0xff] }
  0x86   :  { %2451 = vst [vmem:[#allocation22_spill] sm:$0xff] %v1900_v24  ;;  %2452 = vst [vmem:[#allocation23_spill] sm:$0xff] %v1902_v6  ;;  %v835_v28 = vadd.f32 %v834_v16, %v228_v35  ;;  %v845_v25 = vsel %vm463_vm0, %v220_v37, 0.0  ;;  %v847_v58 = vsel %vm463_vm0, %v229_v11, 0.0  ;;  %v849_v61 = vsel %vm463_vm0, %v238_v2, 0.0  ;;  %v276_v38 = vld [vmem:[#allocation2 + $0x7e8] sm:$0xff] }
  0x87   :  { %2453 = vst [vmem:[#allocation24_spill] sm:$0xff] %v1904_v32  ;;  %v859_v57 = vadd.f32 %v257_v62, %v248_v56  ;;  %v811_v22 = vadd.f32 %v810_v33, %v809_v41  ;;  %v818_v54 = vrot.slane %v817_v47, 4  ;;  %v827_v51 = vadd.f32 %v826_v39, %v245_v55  ;;  %v284_v37 = vld [vmem:[#allocation2 + $0x828] sm:$0xff]  ;;  %v251_v56 = vld [vmem:[#allocation2 + $0x720] sm:$0xff]  ;;  %v277_v55 = vld [vmem:[#allocation2 + $0x7f0] sm:$0xff] }
  0x88   :  { %v836_v48 = vadd.f32 %v835_v28, %v237_v59  ;;  %v846_v32 = vadd.f32 %v845_v25, %v844_v5  ;;  %v851_v42 = vsel %vm463_vm0, %v247_v60, 0.0  ;;  %v869_v46 = vadd.f32 %v258_v21, %v249_v45  ;;  %v260_v62 = vld [vmem:[#allocation2 + $0x768] sm:$0xff]  ;;  %v285_v59 = vld [vmem:[#allocation2 + $0x830] sm:$0xff] }
  0x89   :  { %v860_v35 = vadd.f32 %v859_v57, %v266_v20  ;;  %v812_v16 = vrot.slane %v811_v22, 1  ;;  %v819_v11 = vadd.f32 %v818_v54, %v817_v47  ;;  %v828_v6 = vrot.slane %v827_v51, 4  ;;  %v269_v21 = vld [vmem:[#allocation2 + $0x7b0] sm:$0xff]  ;;  %v286_v57 = vld [vmem:[#allocation2 + $0x838] sm:$0xff] }
  0x8a   :  { %v837_v2 = vadd.f32 %v836_v48, %v246_v13  ;;  %v848_v24 = vadd.f32 %v847_v58, %v846_v32  ;;  %v870_v41 = vadd.f32 %v869_v46, %v267_v29  ;;  %v879_v33 = vadd.f32 %v259_v52, %v250_v12  ;;  %v278_v58 = vld [vmem:[#allocation2 + $0x7f8] sm:$0xff] }
  0x8b   :  { %v861_v1 = vadd.f32 %v860_v35, %v275_v44  ;;  %v1911_v5 = vadd.f32 %v812_v16, %v811_v22  ;;  %v820_v60 = vrot.slane %v819_v11, 2  ;;  %v829_v20 = vadd.f32 %v828_v6, %v827_v51  ;;  %v252_v51 = vld [vmem:[#allocation2 + $0x728] sm:$0xff]  ;;  %v261_v16 = vld [vmem:[#allocation2 + $0x770] sm:$0xff] }
  0x8c   :  { %v838_v45 = vrot.slane %v837_v2, 4  ;;  %v850_v39 = vadd.f32 %v849_v61, %v848_v24  ;;  %v871_v25 = vadd.f32 %v870_v41, %v276_v38  ;;  %v880_v47 = vadd.f32 %v879_v33, %v268_v50  ;;  %v287_v24 = vld [vmem:[#allocation2 + $0x840] sm:$0xff]  ;;  %v270_v41 = vld [vmem:[#allocation2 + $0x7b8] sm:$0xff] }
  0x8d   :  { %2454 = vst [vmem:[#allocation25_spill] sm:$0xff] %v1911_v5  ;;  %v862_v28 = vadd.f32 %v861_v1, %v284_v37  ;;  %v821_v13 = vadd.f32 %v820_v60, %v819_v11  ;;  %v830_v54 = vrot.slane %v829_v20, 2  ;;  %v889_v32 = vadd.f32 %v260_v62, %v251_v56  ;;  %v262_v62 = vld [vmem:[#allocation2 + $0x778] sm:$0xff]  ;;  %v368_v5 = vld [vmem:[#allocation2 + $0xac8] sm:$0xff] }
  0x8e   :  { %v839_v48 = vadd.f32 %v838_v45, %v837_v2  ;;  %v852_v29 = vadd.f32 %v851_v42, %v850_v39  ;;  %v872_v52 = vadd.f32 %v871_v25, %v285_v59  ;;  %v881_v44 = vadd.f32 %v880_v47, %v277_v55  ;;  %v253_v42 = vld [vmem:[#allocation2 + $0x730] sm:$0xff]  ;;  %v263_v25 = vld [vmem:[#allocation2 + $0x780] sm:$0xff] }
  0x8f   :  { %v863_v12 = vrot.slane %v862_v28, 4  ;;  %v822_v22 = vrot.slane %v821_v13, 1  ;;  %v831_v35 = vadd.f32 %v830_v54, %v829_v20  ;;  %v890_v6 = vadd.f32 %v889_v32, %v269_v21  ;;  %v254_v20 = vld [vmem:[#allocation2 + $0x738] sm:$0xff]  ;;  %v271_v47 = vld [vmem:[#allocation2 + $0x7c0] sm:$0xff] }
  0x90   :  { %v840_v46 = vrot.slane %v839_v48, 2  ;;  %v853_v1 = vrot.slane %v852_v29, 4  ;;  %v873_v50 = vrot.slane %v872_v52, 4  ;;  %v882_v38 = vadd.f32 %v881_v44, %v286_v57  ;;  %v279_v57 = vld [vmem:[#allocation2 + $0x800] sm:$0xff] }
  0x91   :  { %v864_v61 = vadd.f32 %v863_v12, %v862_v28  ;;  %v1913_v37 = vadd.f32 %v822_v22, %v821_v13  ;;  %v832_v11 = vrot.slane %v831_v35, 1  ;;  %v891_v56 = vadd.f32 %v890_v6, %v278_v58  ;;  %v280_v22 = vld [vmem:[#allocation2 + $0x808] sm:$0xff] }
  0x92   :  { %v841_v2 = vadd.f32 %v840_v46, %v839_v48  ;;  %v854_v33 = vadd.f32 %v853_v1, %v852_v29  ;;  %v874_v59 = vadd.f32 %v873_v50, %v872_v52  ;;  %v883_v60 = vrot.slane %v882_v38, 4  ;;  %v272_v52 = vld [vmem:[#allocation2 + $0x7c8] sm:$0xff] }
  0x93   :  { %2455 = vst [vmem:[#allocation26_spill] sm:$0xff] %v1913_v37  ;;  %v865_v55 = vrot.slane %v864_v61, 2  ;;  %v1915_v45 = vadd.f32 %v832_v11, %v831_v35  ;;  %v892_v39 = vadd.f32 %v891_v56, %v287_v24  ;;  %v899_v28 = vadd.f32 %v261_v16, %v252_v51  ;;  %v288_v46 = vld [vmem:[#allocation2 + $0x848] sm:$0xff]  ;;  %v255_v51 = vld [vmem:[#allocation2 + $0x740] sm:$0xff] }
  0x94   :  { %v842_v21 = vrot.slane %v841_v2, 1  ;;  %v855_v13 = vrot.slane %v854_v33, 2  ;;  %v875_v48 = vrot.slane %v874_v59, 2  ;;  %v884_v32 = vadd.f32 %v883_v60, %v882_v38  ;;  %v264_v16 = vld [vmem:[#allocation2 + $0x788] sm:$0xff]  ;;  %v289_v38 = vld [vmem:[#allocation2 + $0x850] sm:$0xff] }
  0x95   :  { %2456 = vst [vmem:[#allocation27_spill] sm:$0xff] %v1915_v45  ;;  %v866_v54 = vadd.f32 %v865_v55, %v864_v61  ;;  %v893_v12 = vrot.slane %v892_v39, 4  ;;  %v900_v29 = vadd.f32 %v899_v28, %v270_v41  ;;  %v909_v44 = vadd.f32 %v262_v62, %v253_v42  ;;  %v281_v55 = vld [vmem:[#allocation2 + $0x810] sm:$0xff]  ;;  %v256_v62 = vld [vmem:[#allocation2 + $0x748] sm:$0xff] }
  0x96   :  { %v1917_v58 = vadd.f32 %v842_v21, %v841_v2  ;;  %v856_v35 = vadd.f32 %v855_v13, %v854_v33  ;;  %v876_v1 = vadd.f32 %v875_v48, %v874_v59  ;;  %v885_v24 = vrot.slane %v884_v32, 2  ;;  %v265_v21 = vld [vmem:[#allocation2 + $0x790] sm:$0xff] }
  0x97   :  { %v867_v6 = vrot.slane %v866_v54, 1  ;;  %v894_v50 = vadd.f32 %v893_v12, %v892_v39  ;;  %v901_v11 = vadd.f32 %v900_v29, %v279_v57  ;;  %v910_v56 = vadd.f32 %v909_v44, %v271_v47  ;;  %v273_v28 = vld [vmem:[#allocation2 + $0x7d0] sm:$0xff]  ;;  %v274_v47 = vld [vmem:[#allocation2 + $0x7d8] sm:$0xff] }
  0x98   :  { %2457 = vst [vmem:[#allocation28_spill] sm:$0xff] %v1917_v58  ;;  %v919_v61 = vadd.f32 %v263_v25, %v254_v20  ;;  %v857_v2 = vrot.slane %v856_v35, 1  ;;  %v877_v41 = vrot.slane %v876_v1, 1  ;;  %v886_v42 = vadd.f32 %v885_v24, %v884_v32  ;;  %v290_v58 = vld [vmem:[#allocation2 + $0x858] sm:$0xff] }
  0x99   :  { %v1919_v60 = vadd.f32 %v867_v6, %v866_v54  ;;  %v895_v33 = vrot.slane %v894_v50, 2  ;;  %v902_v13 = vadd.f32 %v901_v11, %v288_v46  ;;  %v911_v59 = vadd.f32 %v910_v56, %v280_v22  ;;  %v282_v57 = vld [vmem:[#allocation2 + $0x818] sm:$0xff]  ;;  %v283_v54 = vld [vmem:[#allocation2 + $0x820] sm:$0xff] }
  0x9a   :  { %v920_v48 = vadd.f32 %v919_v61, %v272_v52  ;;  %v1921_v45 = vadd.f32 %v857_v2, %v856_v35  ;;  %v1923_v39 = vadd.f32 %v877_v41, %v876_v1  ;;  %v887_v20 = vrot.slane %v886_v42, 1  ;;  %v291_v6 = vld [vmem:[#allocation2 + $0x860] sm:$0xff]  ;;  %v292_v35 = vld [vmem:[#allocation2 + $0x868] sm:$0xff]  ;;  %v293_v1 = vld [vmem:[#allocation2 + $0x870] sm:$0xff] }
  0x9b   :  { %2458 = vst [vmem:[#allocation29_spill] sm:$0xff] %v1919_v60  ;;  %v929_v25 = vadd.f32 %v264_v16, %v255_v51  ;;  %v896_v12 = vadd.f32 %v895_v33, %v894_v50  ;;  %v903_v29 = vrot.slane %v902_v13, 4  ;;  %v912_v32 = vadd.f32 %v911_v59, %v289_v38  ;;  %v302_v11 = vld [vmem:[#allocation2 + $0x8b8] sm:$0xff]  ;;  %v303_v50 = vld [vmem:[#allocation2 + $0x8c0] sm:$0xff]  ;;  %v304_v33 = vld [vmem:[#allocation2 + $0x8c8] sm:$0xff] }
  0x9c   :  { %2459 = vst [vmem:[#allocation30_spill] sm:$0xff] %v1921_v45  ;;  %2460 = vst [vmem:[#allocation31_spill] sm:$0xff] %v1923_v39  ;;  %v921_v44 = vadd.f32 %v920_v48, %v281_v55  ;;  %v1925_v24 = vadd.f32 %v887_v20, %v886_v42  ;;  %v939_v52 = vsel %vm463_vm0, %v256_v62, 0.0  ;;  %v940_v22 = vsel %vm463_vm0, %v265_v21, 0.0  ;;  %v294_v2 = vld [vmem:[#allocation2 + $0x878] sm:$0xff]  ;;  %v311_v62 = vld [vmem:[#allocation2 + $0x900] sm:$0xff] }
  0x9d   :  { %v930_v46 = vadd.f32 %v929_v25, %v273_v28  ;;  %v897_v56 = vrot.slane %v896_v12, 1  ;;  %v904_v51 = vadd.f32 %v903_v29, %v902_v13  ;;  %v913_v16 = vrot.slane %v912_v32, 4  ;;  %v295_v28 = vld [vmem:[#allocation2 + $0x880] sm:$0xff]  ;;  %v312_v25 = vld [vmem:[#allocation2 + $0x908] sm:$0xff] }
  0x9e   :  { %2461 = vst [vmem:[#allocation32_spill] sm:$0xff] %v1925_v24  ;;  %v922_v61 = vadd.f32 %v921_v44, %v290_v58  ;;  %v941_v38 = vadd.f32 %v940_v22, %v939_v52  ;;  %v942_v55 = vsel %vm463_vm0, %v274_v47, 0.0  ;;  %v944_v42 = vsel %vm463_vm0, %v283_v54, 0.0  ;;  %v321_v24 = vld [vmem:[#allocation2 + $0x950] sm:$0xff] }
  0x9f   :  { %v931_v41 = vadd.f32 %v930_v46, %v282_v57  ;;  %v1931_v59 = vadd.f32 %v897_v56, %v896_v12  ;;  %v905_v21 = vrot.slane %v904_v51, 2  ;;  %v914_v48 = vadd.f32 %v913_v16, %v912_v32  ;;  %v313_v57 = vld [vmem:[#allocation2 + $0x910] sm:$0xff]  ;;  %v320_v46 = vld [vmem:[#allocation2 + $0x948] sm:$0xff] }
  0xa0   :  { %v923_v20 = vrot.slane %v922_v61, 4  ;;  %v943_v29 = vadd.f32 %v942_v55, %v941_v38  ;;  %v946_v58 = vsel %vm463_vm0, %v292_v35, 0.0  ;;  %v954_v44 = vadd.f32 %v302_v11, %v293_v1  ;;  %v329_v32 = vld [vmem:[#allocation2 + $0x990] sm:$0xff]  ;;  %v296_v38 = vld [vmem:[#allocation2 + $0x888] sm:$0xff]  ;;  %v330_v1 = vld [vmem:[#allocation2 + $0x998] sm:$0xff] }
  0xa1   :  { %2462 = vst [vmem:[#allocation33_spill] sm:$0xff] %v1931_v59  ;;  %v932_v13 = vadd.f32 %v931_v41, %v291_v6  ;;  %v906_v52 = vadd.f32 %v905_v21, %v904_v51  ;;  %v915_v47 = vrot.slane %v914_v48, 2  ;;  %v964_v54 = vadd.f32 %v303_v50, %v294_v2  ;;  %v322_v59 = vld [vmem:[#allocation2 + $0x958] sm:$0xff]  ;;  %v305_v35 = vld [vmem:[#allocation2 + $0x8d0] sm:$0xff] }
  0xa2   :  { %v924_v22 = vadd.f32 %v923_v20, %v922_v61  ;;  %v945_v60 = vadd.f32 %v944_v42, %v943_v29  ;;  %v955_v12 = vadd.f32 %v954_v44, %v311_v62  ;;  %v974_v56 = vadd.f32 %v304_v33, %v295_v28  ;;  %v331_v61 = vld [vmem:[#allocation2 + $0x9a0] sm:$0xff]  ;;  %v297_v28 = vld [vmem:[#allocation2 + $0x890] sm:$0xff]  ;;  %v306_v33 = vld [vmem:[#allocation2 + $0x8d8] sm:$0xff] }
  0xa3   :  { %v933_v39 = vrot.slane %v932_v13, 4  ;;  %v907_v16 = vrot.slane %v906_v52, 1  ;;  %v916_v45 = vadd.f32 %v915_v47, %v914_v48  ;;  %v965_v41 = vadd.f32 %v964_v54, %v312_v25  ;;  %v314_v20 = vld [vmem:[#allocation2 + $0x918] sm:$0xff] }
  0xa4   :  { %v925_v6 = vrot.slane %v924_v22, 2  ;;  %v947_v55 = vadd.f32 %v946_v58, %v945_v60  ;;  %v956_v51 = vadd.f32 %v955_v12, %v320_v46  ;;  %v975_v21 = vadd.f32 %v974_v56, %v313_v57  ;;  %v298_v47 = vld [vmem:[#allocation2 + $0x898] sm:$0xff]  ;;  %v307_v58 = vld [vmem:[#allocation2 + $0x8e0] sm:$0xff] }
  0xa5   :  { %v934_v11 = vadd.f32 %v933_v39, %v932_v13  ;;  %v1934_v2 = vadd.f32 %v907_v16, %v906_v52  ;;  %v917_v50 = vrot.slane %v916_v45, 1  ;;  %v966_v62 = vadd.f32 %v965_v41, %v321_v24  ;;  %v315_v57 = vld [vmem:[#allocation2 + $0x920] sm:$0xff] }
  0xa6   :  { %v926_v42 = vadd.f32 %v925_v6, %v924_v22  ;;  %v948_v48 = vrot.slane %v947_v55, 4  ;;  %v957_v44 = vadd.f32 %v956_v51, %v329_v32  ;;  %v976_v25 = vadd.f32 %v975_v21, %v322_v59  ;;  %v323_v46 = vld [vmem:[#allocation2 + $0x960] sm:$0xff]  ;;  %v316_v32 = vld [vmem:[#allocation2 + $0x928] sm:$0xff] }
  0xa7   :  { %2463 = vst [vmem:[#allocation34_spill] sm:$0xff] %v1934_v2  ;;  %v935_v29 = vrot.slane %v934_v11, 2  ;;  %v1936_v54 = vadd.f32 %v917_v50, %v916_v45  ;;  %v967_v60 = vadd.f32 %v966_v62, %v330_v1  ;;  %v984_v13 = vadd.f32 %v305_v35, %v296_v38  ;;  %v324_v59 = vld [vmem:[#allocation2 + $0x968] sm:$0xff]  ;;  %v299_v38 = vld [vmem:[#allocation2 + $0x8a0] sm:$0xff] }
  0xa8   :  { %v927_v39 = vrot.slane %v926_v42, 1  ;;  %v949_v12 = vadd.f32 %v948_v48, %v947_v55  ;;  %v958_v22 = vrot.slane %v957_v44, 4  ;;  %v977_v24 = vadd.f32 %v976_v25, %v331_v61  ;;  %v332_v51 = vld [vmem:[#allocation2 + $0x9a8] sm:$0xff]  ;;  %v333_v61 = vld [vmem:[#allocation2 + $0x9b0] sm:$0xff] }
  0xa9   :  { %2464 = vst [vmem:[#allocation35_spill] sm:$0xff] %v1936_v54  ;;  %v936_v52 = vadd.f32 %v935_v29, %v934_v11  ;;  %v968_v16 = vrot.slane %v967_v60, 4  ;;  %v985_v6 = vadd.f32 %v984_v13, %v314_v20  ;;  %v994_v41 = vadd.f32 %v306_v33, %v297_v28  ;;  %v308_v35 = vld [vmem:[#allocation2 + $0x8e8] sm:$0xff]  ;;  %v325_v29 = vld [vmem:[#allocation2 + $0x970] sm:$0xff] }
  0xaa   :  { %v1938_v56 = vadd.f32 %v927_v39, %v926_v42  ;;  %v950_v21 = vrot.slane %v949_v12, 2  ;;  %v959_v50 = vadd.f32 %v958_v22, %v957_v44  ;;  %v978_v1 = vrot.slane %v977_v24, 4  ;;  %v317_v33 = vld [vmem:[#allocation2 + $0x930] sm:$0xff]  ;;  %v334_v44 = vld [vmem:[#allocation2 + $0x9b8] sm:$0xff] }
  0xab   :  { %v937_v45 = vrot.slane %v936_v52, 1  ;;  %v969_v62 = vadd.f32 %v968_v16, %v967_v60  ;;  %v986_v54 = vadd.f32 %v985_v6, %v323_v46  ;;  %v995_v11 = vadd.f32 %v994_v41, %v315_v57  ;;  %v300_v46 = vld [vmem:[#allocation2 + $0x8a8] sm:$0xff]  ;;  %v309_v57 = vld [vmem:[#allocation2 + $0x8f0] sm:$0xff] }
  0xac   :  { %2465 = vst [vmem:[#allocation36_spill] sm:$0xff] %v1938_v56  ;;  %v1004_v55 = vadd.f32 %v307_v58, %v298_v47  ;;  %v951_v48 = vadd.f32 %v950_v21, %v949_v12  ;;  %v960_v20 = vrot.slane %v959_v50, 2  ;;  %v979_v28 = vadd.f32 %v978_v1, %v977_v24  ;;  %v326_v47 = vld [vmem:[#allocation2 + $0x978] sm:$0xff] }
  0xad   :  { %v1940_v42 = vadd.f32 %v937_v45, %v936_v52  ;;  %v970_v25 = vrot.slane %v969_v62, 2  ;;  %v987_v39 = vadd.f32 %v986_v54, %v332_v51  ;;  %v996_v13 = vadd.f32 %v995_v11, %v324_v59  ;;  %v301_v54 = vld [vmem:[#allocation2 + $0x8b0] sm:$0xff]  ;;  %v318_v59 = vld [vmem:[#allocation2 + $0x938] sm:$0xff] }
  0xae   :  { %v1005_v56 = vadd.f32 %v1004_v55, %v316_v32  ;;  %v952_v22 = vrot.slane %v951_v48, 1  ;;  %v961_v2 = vadd.f32 %v960_v20, %v959_v50  ;;  %v980_v37 = vrot.slane %v979_v28, 2  ;;  %v335_v32 = vld [vmem:[#allocation2 + $0x9c0] sm:$0xff] }
  0xaf   :  { %2466 = vst [vmem:[#allocation37_spill] sm:$0xff] %v1940_v42  ;;  %v1014_v60 = vadd.f32 %v308_v35, %v299_v38  ;;  %v971_v58 = vadd.f32 %v970_v25, %v969_v62  ;;  %v988_v16 = vrot.slane %v987_v39, 4  ;;  %v997_v52 = vadd.f32 %v996_v13, %v333_v61  ;;  %v310_v38 = vld [vmem:[#allocation2 + $0x8f8] sm:$0xff]  ;;  %v319_v61 = vld [vmem:[#allocation2 + $0x940] sm:$0xff] }
  0xb0   :  { %v1006_v6 = vadd.f32 %v1005_v56, %v325_v29  ;;  %v1942_v12 = vadd.f32 %v952_v22, %v951_v48  ;;  %v962_v24 = vrot.slane %v961_v2, 1  ;;  %v981_v41 = vadd.f32 %v980_v37, %v979_v28  ;;  %v327_v56 = vld [vmem:[#allocation2 + $0x980] sm:$0xff]  ;;  %v328_v28 = vld [vmem:[#allocation2 + $0x988] sm:$0xff] }
  0xb1   :  { %v1015_v45 = vadd.f32 %v1014_v60, %v317_v33  ;;  %v972_v51 = vrot.slane %v971_v58, 1  ;;  %v989_v21 = vadd.f32 %v988_v16, %v987_v39  ;;  %v998_v50 = vrot.slane %v997_v52, 4 }
  0xb2   :  { %2467 = vst [vmem:[#allocation38_spill] sm:$0xff] %v1942_v12  ;;  %v1007_v1 = vadd.f32 %v1006_v6, %v334_v44  ;;  %v1944_v35 = vadd.f32 %v962_v24, %v961_v2  ;;  %v982_v11 = vrot.slane %v981_v41, 1  ;;  %v1024_v55 = vadd.f32 %v309_v57, %v300_v46  ;;  %v336_v44 = vld [vmem:[#allocation2 + $0x9c8] sm:$0xff]  ;;  %v337_v2 = vld [vmem:[#allocation2 + $0x9d0] sm:$0xff]  ;;  %v338_v57 = vld [vmem:[#allocation2 + $0x9d8] sm:$0xff] }
  0xb3   :  { %v1016_v62 = vadd.f32 %v1015_v45, %v326_v47  ;;  %v1946_v29 = vadd.f32 %v972_v51, %v971_v58  ;;  %v990_v48 = vrot.slane %v989_v21, 2  ;;  %v999_v37 = vadd.f32 %v998_v50, %v997_v52  ;;  %v347_v58 = vld [vmem:[#allocation2 + $0xa20] sm:$0xff]  ;;  %v348_v45 = vld [vmem:[#allocation2 + $0xa28] sm:$0xff]  ;;  %v342_v12 = vld [vmem:[#allocation2 + $0x9f8] sm:$0xff] }
  0xb4   :  { %2468 = vst [vmem:[#allocation39_spill] sm:$0xff] %v1944_v35  ;;  %v1008_v20 = vrot.slane %v1007_v1, 4  ;;  %v1948_v33 = vadd.f32 %v982_v11, %v981_v41  ;;  %v1025_v39 = vadd.f32 %v1024_v55, %v318_v59  ;;  %v1034_v13 = vsel %vm463_vm0, %v301_v54, 0.0  ;;  %v339_v41 = vld [vmem:[#allocation2 + $0x9e0] sm:$0xff]  ;;  %v340_v50 = vld [vmem:[#allocation2 + $0x9e8] sm:$0xff] }
  0xb5   :  { %2469 = vst [vmem:[#allocation40_spill] sm:$0xff] %v1946_v29  ;;  %v1017_v25 = vadd.f32 %v1016_v62, %v335_v32  ;;  %v991_v22 = vadd.f32 %v990_v48, %v989_v21  ;;  %v1000_v60 = vrot.slane %v999_v37, 2  ;;  %v1035_v46 = vsel %vm463_vm0, %v310_v38, 0.0  ;;  %v349_v21 = vld [vmem:[#allocation2 + $0xa30] sm:$0xff]  ;;  %v356_v11 = vld [vmem:[#allocation2 + $0xa68] sm:$0xff] }
  0xb6   :  { %2470 = vst [vmem:[#allocation41_spill] sm:$0xff] %v1948_v33  ;;  %v1009_v47 = vadd.f32 %v1008_v20, %v1007_v1  ;;  %v1026_v6 = vadd.f32 %v1025_v39, %v327_v56  ;;  %v1036_v52 = vadd.f32 %v1035_v46, %v1034_v13  ;;  %v1037_v24 = vsel %vm463_vm0, %v319_v61, 0.0  ;;  %v341_v48 = vld [vmem:[#allocation2 + $0x9f0] sm:$0xff]  ;;  %v350_v46 = vld [vmem:[#allocation2 + $0xa38] sm:$0xff] }
  0xb7   :  { %v1018_v16 = vrot.slane %v1017_v25, 4  ;;  %v992_v32 = vrot.slane %v991_v22, 1  ;;  %v1001_v59 = vadd.f32 %v1000_v60, %v999_v37  ;;  %v1039_v54 = vsel %vm463_vm0, %v328_v28, 0.0  ;;  %v357_v56 = vld [vmem:[#allocation2 + $0xa70] sm:$0xff]  ;;  %v358_v37 = vld [vmem:[#allocation2 + $0xa78] sm:$0xff] }
  0xb8   :  { %v1010_v51 = vrot.slane %v1009_v47, 2  ;;  %v1027_v62 = vadd.f32 %v1026_v6, %v336_v44  ;;  %v1038_v38 = vadd.f32 %v1037_v24, %v1036_v52  ;;  %v1041_v55 = vsel %vm463_vm0, %v337_v2, 0.0  ;;  %v365_v60 = vld [vmem:[#allocation2 + $0xab0] sm:$0xff]  ;;  %v366_v44 = vld [vmem:[#allocation2 + $0xab8] sm:$0xff]  ;;  %v367_v24 = vld [vmem:[#allocation2 + $0xac0] sm:$0xff] }
  0xb9   :  { %v1019_v1 = vadd.f32 %v1018_v16, %v1017_v25  ;;  %v1955_v20 = vadd.f32 %v992_v32, %v991_v22  ;;  %v1002_v61 = vrot.slane %v1001_v59, 1  ;;  %v1049_v13 = vadd.f32 %v347_v58, %v338_v57  ;;  %v351_v25 = vld [vmem:[#allocation2 + $0xa40] sm:$0xff]  ;;  %v374_v32 = vld [vmem:[#allocation2 + $0xaf8] sm:$0xff] }
  0xba   :  { %v1011_v39 = vadd.f32 %v1010_v51, %v1009_v47  ;;  %v1028_v28 = vrot.slane %v1027_v62, 4  ;;  %v1040_v29 = vadd.f32 %v1039_v54, %v1038_v38  ;;  %v1059_v35 = vadd.f32 %v348_v45, %v339_v41  ;;  %v359_v22 = vld [vmem:[#allocation2 + $0xa80] sm:$0xff]  ;;  %v360_v38 = vld [vmem:[#allocation2 + $0xa88] sm:$0xff] }
  0xbb   :  { %2471 = vst [vmem:[#allocation42_spill] sm:$0xff] %v1955_v20  ;;  %v1020_v33 = vrot.slane %v1019_v1, 2  ;;  %v1957_v16 = vadd.f32 %v1002_v61, %v1001_v59  ;;  %v1050_v6 = vadd.f32 %v1049_v13, %v356_v11  ;;  %v1069_v52 = vadd.f32 %v349_v21, %v340_v50  ;;  %v375_v20 = vld [vmem:[#allocation2 + $0xb00] sm:$0xff]  ;;  %v376_v59 = vld [vmem:[#allocation2 + $0xb08] sm:$0xff] }
  0xbc   :  { %v1012_v2 = vrot.slane %v1011_v39, 1  ;;  %v1029_v57 = vadd.f32 %v1028_v28, %v1027_v62  ;;  %v1042_v58 = vadd.f32 %v1041_v55, %v1040_v29  ;;  %v1060_v51 = vadd.f32 %v1059_v35, %v357_v56  ;;  %v343_v21 = vld [vmem:[#allocation2 + $0xa00] sm:$0xff]  ;;  %v352_v13 = vld [vmem:[#allocation2 + $0xa48] sm:$0xff]  ;;  %v369_v35 = vld [vmem:[#allocation2 + $0xad0] sm:$0xff] }
  0xbd   :  { %2472 = vst [vmem:[#allocation43_spill] sm:$0xff] %v1957_v16  ;;  %v1021_v47 = vadd.f32 %v1020_v33, %v1019_v1  ;;  %v1051_v54 = vadd.f32 %v1050_v6, %v365_v60  ;;  %v1070_v41 = vadd.f32 %v1069_v52, %v358_v37  ;;  %v1079_v45 = vadd.f32 %v350_v46, %v341_v48  ;;  %v377_v62 = vld [vmem:[#allocation2 + $0xb10] sm:$0xff]  ;;  %v378_v6 = vld [vmem:[#allocation2 + $0xb18] sm:$0xff] }
  0xbe   :  { %v1959_v42 = vadd.f32 %v1012_v2, %v1011_v39  ;;  %v1030_v16 = vrot.slane %v1029_v57, 2  ;;  %v1043_v11 = vrot.slane %v1042_v58, 4  ;;  %v1061_v50 = vadd.f32 %v1060_v51, %v366_v44  ;;  %v361_v46 = vld [vmem:[#allocation2 + $0xa90] sm:$0xff] }
  0xbf   :  { %v1022_v61 = vrot.slane %v1021_v47, 1  ;;  %v1052_v63 = vadd.f32 %v1051_v54, %v374_v32  ;;  %v1071_v33 = vadd.f32 %v1070_v41, %v367_v24  ;;  %v1080_v1 = vadd.f32 %v1079_v45, %v359_v22  ;;  %v344_v24 = vld [vmem:[#allocation2 + $0xa08] sm:$0xff]  ;;  %v353_v22 = vld [vmem:[#allocation2 + $0xa50] sm:$0xff]  ;;  %v362_v45 = vld [vmem:[#allocation2 + $0xa98] sm:$0xff] }
  0xc0   :  { %v1089_v29 = vadd.f32 %v351_v25, %v342_v12  ;;  %v1031_v56 = vadd.f32 %v1030_v16, %v1029_v57  ;;  %v1044_v39 = vadd.f32 %v1043_v11, %v1042_v58  ;;  %v1062_v48 = vadd.f32 %v1061_v50, %v375_v20  ;;  %v370_v12 = vld [vmem:[#allocation2 + $0xad8] sm:$0xff] }
  0xc1   :  { %v1961_v55 = vadd.f32 %v1022_v61, %v1021_v47  ;;  %v1053_v37 = vrot.slane %v1052_v63, 4  ;;  %v1072_v60 = vadd.f32 %v1071_v33, %v376_v59  ;;  %v1081_v28 = vadd.f32 %v1080_v1, %v368_v5  ;;  %v379_v5 = vld [vmem:[#allocation2 + $0xb20] sm:$0xff]  ;;  %v345_v1 = vld [vmem:[#allocation2 + $0xa10] sm:$0xff] }
  0xc2   :  { %v1090_v2 = vadd.f32 %v1089_v29, %v360_v38  ;;  %v1032_v44 = vrot.slane %v1031_v56, 1  ;;  %v1045_v52 = vrot.slane %v1044_v39, 2  ;;  %v1063_v51 = vrot.slane %v1062_v48, 4  ;;  %v371_v29 = vld [vmem:[#allocation2 + $0xae0] sm:$0xff] }
  0xc3   :  { %v1099_v32 = vadd.f32 %v352_v13, %v343_v21  ;;  %v1054_v25 = vadd.f32 %v1053_v37, %v1052_v63  ;;  %v1073_v54 = vrot.slane %v1072_v60, 4  ;;  %v1082_v47 = vadd.f32 %v1081_v28, %v377_v62  ;;  %v354_v63 = vld [vmem:[#allocation2 + $0xa58] sm:$0xff] }
  0xc4   :  { %v1091_v41 = vadd.f32 %v1090_v2, %v369_v35  ;;  %v1963_v16 = vadd.f32 %v1032_v44, %v1031_v56  ;;  %v1046_v20 = vadd.f32 %v1045_v52, %v1044_v39  ;;  %v1064_v57 = vadd.f32 %v1063_v51, %v1062_v48  ;;  %v363_v2 = vld [vmem:[#allocation2 + $0xaa0] sm:$0xff] }
  0xc5   :  { %v1100_v58 = vadd.f32 %v1099_v32, %v361_v46  ;;  %v1055_v38 = vrot.slane %v1054_v25, 2  ;;  %v1074_v59 = vadd.f32 %v1073_v54, %v1072_v60  ;;  %v1083_v61 = vrot.slane %v1082_v47, 4  ;;  %v380_v60 = vld [vmem:[#allocation2 + $0xb28] sm:$0xff]  ;;  %v346_v32 = vld [vmem:[#allocation2 + $0xa18] sm:$0xff] }
  0xc6   :  { %v1092_v11 = vadd.f32 %v1091_v41, %v378_v6  ;;  %v1047_v50 = vrot.slane %v1046_v20, 1  ;;  %v1065_v21 = vrot.slane %v1064_v57, 2  ;;  %v1109_v33 = vadd.f32 %v353_v22, %v344_v24  ;;  %v372_v41 = vld [vmem:[#allocation2 + $0xae8] sm:$0xff] }
  0xc7   :  { %v1101_v13 = vadd.f32 %v1100_v58, %v370_v12  ;;  %v1056_v62 = vadd.f32 %v1055_v38, %v1054_v25  ;;  %v1075_v35 = vrot.slane %v1074_v59, 2  ;;  %v1084_v56 = vadd.f32 %v1083_v61, %v1082_v47  ;;  %v355_v25 = vld [vmem:[#allocation2 + $0xa60] sm:$0xff] }
  0xc8   :  { %v1093_v37 = vrot.slane %v1092_v11, 4  ;;  %v1965_v39 = vadd.f32 %v1047_v50, %v1046_v20  ;;  %v1066_v48 = vadd.f32 %v1065_v21, %v1064_v57  ;;  %v1110_v28 = vadd.f32 %v1109_v33, %v362_v45  ;;  %v373_v50 = vld [vmem:[#allocation2 + $0xaf0] sm:$0xff] }
  0xc9   :  { %v1102_v46 = vadd.f32 %v1101_v13, %v379_v5  ;;  %v1057_v44 = vrot.slane %v1056_v62, 1  ;;  %v1076_v6 = vadd.f32 %v1075_v35, %v1074_v59  ;;  %v1085_v52 = vrot.slane %v1084_v56, 2  ;;  %v364_v5 = vld [vmem:[#allocation2 + $0xaa8] sm:$0xff] }
  0xca   :  { %v1094_v51 = vadd.f32 %v1093_v37, %v1092_v11  ;;  %v1067_v24 = vrot.slane %v1066_v48, 1  ;;  %v1111_v12 = vadd.f32 %v1110_v28, %v371_v29  ;;  %v1119_v54 = vadd.f32 %v354_v63, %v345_v1  ;;  %v381_v11 = vld [vmem:[#allocation2 + $0xb30] sm:$0xff]  ;;  %v382_v63 = vld [vmem:[#allocation2 + $0xb38] sm:$0xff] }
  0xcb   :  { %v1103_v22 = vrot.slane %v1102_v46, 4  ;;  %v1967_v47 = vadd.f32 %v1057_v44, %v1056_v62  ;;  %v1077_v20 = vrot.slane %v1076_v6, 1  ;;  %v1086_v58 = vadd.f32 %v1085_v52, %v1084_v56 }
  0xcc   :  { %v1095_v57 = vrot.slane %v1094_v51, 2  ;;  %v1969_v45 = vadd.f32 %v1067_v24, %v1066_v48  ;;  %v1112_v61 = vadd.f32 %v1111_v12, %v380_v60  ;;  %v1120_v59 = vadd.f32 %v1119_v54, %v363_v2 }
  0xcd   :  { %v1104_v38 = vadd.f32 %v1103_v22, %v1102_v46  ;;  %v1971_v21 = vadd.f32 %v1077_v20, %v1076_v6  ;;  %v1087_v13 = vrot.slane %v1086_v58, 1  ;;  %v1129_v1 = vsel %vm463_vm0, %v346_v32, 0.0 }
  0xce   :  { %v1096_v33 = vadd.f32 %v1095_v57, %v1094_v51  ;;  %v1113_v62 = vrot.slane %v1112_v61, 4  ;;  %v1121_v35 = vadd.f32 %v1120_v59, %v372_v41  ;;  %v1130_v56 = vsel %vm463_vm0, %v355_v25, 0.0 }
  0xcf   :  { %v1105_v29 = vrot.slane %v1104_v38, 2  ;;  %v1975_v37 = vadd.f32 %v1087_v13, %v1086_v58  ;;  %v1131_v46 = vadd.f32 %v1130_v56, %v1129_v1  ;;  %v1132_v28 = vsel %vm463_vm0, %v364_v5, 0.0 }
  0xd0   :  { %v1097_v48 = vrot.slane %v1096_v33, 1  ;;  %v1114_v60 = vadd.f32 %v1113_v62, %v1112_v61  ;;  %v1122_v44 = vadd.f32 %v1121_v35, %v381_v11  ;;  %v1134_v6 = vsel %vm463_vm0, %v373_v50, 0.0 }
  0xd1   :  { %v1106_v2 = vadd.f32 %v1105_v29, %v1104_v38  ;;  %v1133_v51 = vadd.f32 %v1132_v28, %v1131_v46  ;;  %v1136_v32 = vsel %vm463_vm0, %v382_v63, 0.0  ;;  %v1144_v24 = vmul.f32 0.025, %v1809_v8  ;;  %v2477_v28 = vld [vmem:[#allocation8_spill] sm:$0xff] }
  0xd2   :  { %v1979_v52 = vadd.f32 %v1097_v48, %v1096_v33  ;;  %v1115_v12 = vrot.slane %v1114_v60, 2  ;;  %v1123_v54 = vrot.slane %v1122_v44, 4  ;;  %v1145_v25 = vmul.f32 0.025, %v1811_v9 }
  0xd3   :  { %v1107_v22 = vrot.slane %v1106_v2, 1  ;;  %v1135_v41 = vadd.f32 %v1134_v6, %v1133_v51  ;;  %v1146_v20 = vmul.f32 0.025, %v1813_v10  ;;  %v1147_v58 = vmul.f32 0.025, %v1815_v15 }
  0xd4   :  { %v1148_v57 = vmul.f32 0.025, %v1817_v17  ;;  %v1116_v38 = vadd.f32 %v1115_v12, %v1114_v60  ;;  %v1124_v61 = vadd.f32 %v1123_v54, %v1122_v44  ;;  %v1149_v59 = vmul.f32 0.025, %v1819_v18  ;;  %v2484_v12 = vld [vmem:[#allocation14_spill] sm:$0xff] }
  0xd5   :  { %v1987_v5 = vadd.f32 %v1107_v22, %v1106_v2  ;;  %v1137_v50 = vadd.f32 %v1136_v32, %v1135_v41  ;;  %v1150_v8 = vmul.f32 0.025, %v1821_v23  ;;  %v1151_v11 = vmul.f32 0.025, %v1824_v30  ;;  %v2478_v2 = vld [vmem:[#allocation9_spill] sm:$0xff]  ;;  %v2482_v32 = vld [vmem:[#allocation12_spill] sm:$0xff] }
  0xd6   :  { %v1993_v9 = vmul.f32 0.025, %v1827_v36  ;;  %v1117_v13 = vrot.slane %v1116_v38, 1  ;;  %v1125_v10 = vrot.slane %v1124_v61, 2  ;;  %v1153_v15 = vmul.f32 0.025, %v1829_v3 }
  0xd7   :  { %v1154_v17 = vmul.f32 0.025, %v1831_v4  ;;  %v1138_v33 = vrot.slane %v1137_v50, 4  ;;  %v1155_v1 = vmul.f32 0.025, %v1833_v14  ;;  %v1999_v18 = vpack.c.bf16 %v1145_v25, %v1144_v24  ;;  %v2483_v24 = vld [vmem:[#allocation13_spill] sm:$0xff] }
  0xd8   :  { %2473 = vst [vmem:[#allocation44_spill] sm:$0xff] %v1993_v9  ;;  %v1156_v63 = vmul.f32 0.025, %v1835_v19  ;;  %v2001_v29 = vadd.f32 %v1117_v13, %v1116_v38  ;;  %v1126_v23 = vadd.f32 %v1125_v10, %v1124_v61  ;;  %v1157_v30 = vmul.f32 0.025, %v1837_v26  ;;  %v2485_v25 = vld [vmem:[#allocation15_spill] sm:$0xff] }
  0xd9   :  { %2474 = vst [vmem:[#allocation45_spill] sm:$0xff] %v1999_v18  ;;  %v1158_v36 = vmul.f32 0.025, %v1839_v27  ;;  %v1139_v62 = vadd.f32 %v1138_v33, %v1137_v50  ;;  %v1159_v35 = vmul.f32 0.025, %v1843_v34  ;;  %v2012_v48 = vpack.c.bf16 %v1147_v58, %v1146_v20  ;;  %v2486_v20 = vld [vmem:[#allocation16_spill] sm:$0xff] }
  0xda   :  { %v1160_v3 = vmul.f32 0.025, %v1848_v53  ;;  %v2008_v4 = vmul.f32 0.025, %v1850_v40  ;;  %v1127_v14 = vrot.slane %v1126_v23, 1  ;;  %v2016_v60 = vpack.c.bf16 %v1149_v59, %v1148_v57  ;;  %v2480_v53 = vld [vmem:[#allocation10_spill] sm:$0xff] }
  0xdb   :  { %v1162_v19 = vmul.f32 0.025, %v1852_v43  ;;  %v1163_v56 = vmul.f32 0.025, %v1854_v49  ;;  %2476 = vst [vmem:[#allocation47_spill] sm:$0xff] %v2012_v48  ;;  %v1140_v46 = vrot.slane %v1139_v62, 2  ;;  %v2031_v61 = vpack.c.bf16 %v1151_v11, %v1150_v8 }
  0xdc   :  { %2475 = vst [vmem:[#allocation46_spill] sm:$0xff] %v2008_v4  ;;  %v1164_v26 = vmul.f32 0.025, %v2477_v28  ;;  %v1165_v27 = vmul.f32 0.025, %v2478_v2  ;;  %2479 = vst [vmem:[#allocation8_spill] sm:$0xff] %v2016_v60  ;;  %v2018_v34 = vadd.f32 %v1127_v14, %v1126_v23  ;;  %v2042_v28 = vpack.c.bf16 %v1154_v17, %v1153_v15 }
  0xdd   :  { %v1166_v44 = vmul.f32 0.025, %v2480_v53  ;;  %v2481_v40 = vld [vmem:[#allocation11_spill] sm:$0xff]  ;;  %v1168_v51 = vmul.f32 0.025, %v1869_v7  ;;  %v1141_v43 = vadd.f32 %v1140_v46, %v1139_v62  ;;  %v2487_v57 = vld [vmem:[#allocation17_spill] sm:$0xff] }
  0xde   :  { %v1167_v6 = vmul.f32 0.025, %v2481_v40  ;;  %v1169_v49 = vmul.f32 0.025, %v2482_v32  ;;  %v2025_v22 = vmul.f32 0.025, %v2483_v24  ;;  %v2079_v48 = vpack.c.bf16 %v1165_v27, %v1164_v26 }
  0xdf   :  { %v1171_v54 = vmul.f32 0.025, %v2484_v12  ;;  %v1172_v41 = vmul.f32 0.025, %v2485_v25  ;;  %v1173_v58 = vmul.f32 0.025, %v2486_v20 }
  0xe0   :  { %v1174_v38 = vmul.f32 0.025, %v2487_v57  ;;  %2488 = vst [vmem:[#allocation9_spill] sm:$0xff] %v2031_v61  ;;  %v1142_v59 = vrot.slane %v1141_v43, 1  ;;  %v2489_v50 = vld [vmem:[#allocation18_spill] sm:$0xff]  ;;  %v2490_v23 = vld [vmem:[#allocation19_spill] sm:$0xff] }
  0xe1   :  { %v1175_v13 = vmul.f32 0.025, %v2489_v50  ;;  %v1176_v7 = vmul.f32 0.025, %v1890_v31  ;;  %v1177_v33 = vmul.f32 0.025, %v1892_v0  ;;  %v2050_v50 = vpack.c.bf16 %v1156_v63, %v1155_v1 }
  0xe2   :  { %v1178_v62 = vmul.f32 0.025, %v2490_v23  ;;  %v2491_v14 = vld [vmem:[#allocation20_spill] sm:$0xff]  ;;  %2492 = vst [vmem:[#allocation10_spill] sm:$0xff] %v2042_v28  ;;  %v1143_v2 = vadd.f32 %v1142_v59, %v1141_v43  ;;  %v2493_v8 = vld [vmem:[#allocation21_spill] sm:$0xff]  ;;  %v2494_v53 = vld [vmem:[#allocation22_spill] sm:$0xff]  ;;  %v2057_v59 = vpack.c.bf16 %v1158_v36, %v1157_v30 }
  0xe3   :  { %v2040_v46 = vmul.f32 0.025, %v2491_v14  ;;  %v1180_v11 = vmul.f32 0.025, %v2493_v8  ;;  %v1181_v40 = vmul.f32 0.025, %v2494_v53 }
  0xe4   :  { %v2495_v32 = vld [vmem:[#allocation23_spill] sm:$0xff]  ;;  %v2496_v31 = vld [vmem:[#allocation24_spill] sm:$0xff]  ;;  %v2497_v25 = vld [vmem:[#allocation25_spill] sm:$0xff]  ;;  %2499 = vst [vmem:[#allocation11_spill] sm:$0xff] %v2050_v50  ;;  %v1207_v26 = vmul.f32 0.025, %v1967_v47 }
  0xe5   :  { %v1182_v24 = vmul.f32 0.025, %v2495_v32  ;;  %v1183_v12 = vmul.f32 0.025, %v2496_v31  ;;  %v1184_v20 = vmul.f32 0.025, %v2497_v25  ;;  %v2062_v25 = vpack.c.bf16 %v1160_v3, %v1159_v35 }
  0xe6   :  { %v2498_v57 = vld [vmem:[#allocation26_spill] sm:$0xff]  ;;  %v2500_v23 = vld [vmem:[#allocation27_spill] sm:$0xff]  ;;  %v2501_v10 = vld [vmem:[#allocation28_spill] sm:$0xff]  ;;  %2503 = vst [vmem:[#allocation12_spill] sm:$0xff] %v2057_v59  ;;  %v1208_v27 = vmul.f32 0.025, %v1969_v45  ;;  %v2107_v45 = vpack.c.bf16 %v1174_v38, %v1173_v58 }
  0xe7   :  { %v1185_v0 = vmul.f32 0.025, %v2498_v57  ;;  %v1186_v14 = vmul.f32 0.025, %v2500_v23  ;;  %v1187_v15 = vmul.f32 0.025, %v2501_v10 }
  0xe8   :  { %v2502_v17 = vld [vmem:[#allocation30_spill] sm:$0xff]  ;;  %v2504_v8 = vld [vmem:[#allocation29_spill] sm:$0xff]  ;;  %v2505_v32 = vld [vmem:[#allocation31_spill] sm:$0xff]  ;;  %2507 = vst [vmem:[#allocation13_spill] sm:$0xff] %v2062_v25  ;;  %v2105_v47 = vmul.f32 0.025, %v1143_v2 }
  0xe9   :  { %v2055_v43 = vmul.f32 0.025, %v2502_v17  ;;  %v1189_v53 = vmul.f32 0.025, %v2504_v8  ;;  %v1190_v28 = vmul.f32 0.025, %v2505_v32  ;;  %v2074_v32 = vpack.c.bf16 %v1163_v56, %v1162_v19 }
  0xea   :  { %v2506_v31 = vld [vmem:[#allocation32_spill] sm:$0xff]  ;;  %v2508_v57 = vld [vmem:[#allocation33_spill] sm:$0xff]  ;;  %v2509_v63 = vld [vmem:[#allocation34_spill] sm:$0xff]  ;;  %v1205_v19 = vmul.f32 0.025, %v1963_v16 }
  0xeb   :  { %v1191_v9 = vmul.f32 0.025, %v2506_v31  ;;  %v1192_v1 = vmul.f32 0.025, %v2508_v57  ;;  %v1193_v50 = vmul.f32 0.025, %v2509_v63 }
  0xec   :  { %v2510_v23 = vld [vmem:[#allocation35_spill] sm:$0xff]  ;;  %v2511_v17 = vld [vmem:[#allocation36_spill] sm:$0xff]  ;;  %v2512_v36 = vld [vmem:[#allocation37_spill] sm:$0xff]  ;;  %v2089_v56 = vmul.f32 0.025, %v1965_v39 }
  0xed   :  { %v1194_v61 = vmul.f32 0.025, %v2510_v23  ;;  %v1195_v30 = vmul.f32 0.025, %v2511_v17  ;;  %v1196_v59 = vmul.f32 0.025, %v2512_v36  ;;  %v2084_v36 = vpack.c.bf16 %v1167_v6, %v1166_v44 }
  0xee   :  { %v2513_v8 = vld [vmem:[#allocation38_spill] sm:$0xff]  ;;  %v2514_v35 = vld [vmem:[#allocation39_spill] sm:$0xff]  ;;  %v2515_v31 = vld [vmem:[#allocation40_spill] sm:$0xff]  ;;  %v1203_v17 = vmul.f32 0.025, %v1959_v42  ;;  %v1699_v42 = vpack.c.bf16 %v2025_v22, %v2025_v22  ;;  %v2101_v6 = vpack.c.bf16 %v1172_v41, %v1171_v54  ;;  %v2119_v22 = vpack.c.bf16 %v1185_v0, %v1184_v20 }
  0xef   :  { %v2072_v60 = vmul.f32 0.025, %v2513_v8  ;;  %v1198_v3 = vmul.f32 0.025, %v2514_v35  ;;  %v1199_v57 = vmul.f32 0.025, %v2515_v31  ;;  %v2091_v35 = vpack.c.bf16 %v1169_v49, %v1168_v51 }
  0xf0   :  { %v2516_v25 = vld [vmem:[#allocation41_spill] sm:$0xff]  ;;  %v2517_v23 = vld [vmem:[#allocation42_spill] sm:$0xff]  ;;  %v2518_v10 = vld [vmem:[#allocation43_spill] sm:$0xff]  ;;  %v1204_v8 = vmul.f32 0.025, %v1961_v55  ;;  %v2111_v49 = vpack.c.bf16 %v1178_v62, %v1177_v33  ;;  %v2125_v54 = vpack.c.bf16 %v1190_v28, %v1189_v53  ;;  %v2127_v41 = vpack.c.bf16 %v1192_v1, %v1191_v9 }
  0xf1   :  { %v1200_v63 = vmul.f32 0.025, %v2516_v25  ;;  %v1201_v18 = vmul.f32 0.025, %v2517_v23  ;;  %v1202_v4 = vmul.f32 0.025, %v2518_v10  ;;  %v2129_v58 = vpack.c.bf16 %v1194_v61, %v1193_v50 }
  0xf2   :  { %v1209_v25 = vmul.f32 0.025, %v1971_v21  ;;  %v1210_v44 = vmul.f32 0.025, %v1975_v37  ;;  %v1211_v55 = vmul.f32 0.025, %v1979_v52  ;;  %v2109_v21 = vpack.c.bf16 %v1176_v7, %v1175_v13 }
  0xf3   :  { %v1212_v16 = vmul.f32 0.025, %v1987_v5  ;;  %v1213_v39 = vmul.f32 0.025, %v2001_v29  ;;  %v1214_v51 = vmul.f32 0.025, %v2018_v34  ;;  %v1704_v37 = vpack.c.bf16 %v2040_v46, %v2040_v46 }
  0xf4   :  { %v2115_v52 = vpack.c.bf16 %v1181_v40, %v1180_v11  ;;  %v2117_v5 = vpack.c.bf16 %v1183_v12, %v1182_v24  ;;  %v2121_v29 = vpack.c.bf16 %v1187_v15, %v1186_v14  ;;  %v1709_v34 = vpack.c.bf16 %v2055_v43, %v2055_v43  ;;  %v2520_v12 = vld [vmem:[#allocation47_spill] sm:$0xff]  ;;  %v2521_v50 = vld [vmem:[#allocation8_spill] sm:$0xff]  ;;  %v2522_v43 = vld [vmem:[#allocation9_spill] sm:$0xff] }
  0xf5   :  { %v2131_v38 = vpack.c.bf16 %v1196_v59, %v1195_v30  ;;  %v1714_v13 = vpack.c.bf16 %v2072_v60, %v2072_v60  ;;  %v2135_v7 = vpack.c.bf16 %v1199_v57, %v1198_v3  ;;  %v2137_v33 = vpack.c.bf16 %v1201_v18, %v1200_v63  ;;  %v2519_v18 = vld [vmem:[#allocation45_spill] sm:$0xff]  ;;  %v2523_v1 = vld [vmem:[#allocation44_spill] sm:$0xff]  ;;  %v2525_v3 = vld [vmem:[#allocation10_spill] sm:$0xff] }
  0xf6   :  { %v2139_v62 = vpack.c.bf16 %v1203_v17, %v1202_v4  ;;  %v2141_v46 = vpack.c.bf16 %v1205_v19, %v1204_v8  ;;  %v1719_v28 = vpack.c.bf16 %v2089_v56, %v2089_v56  ;;  %v2145_v9 = vpack.c.bf16 %v1208_v27, %v1207_v26  ;;  %v2526_v63 = vld [vmem:[#allocation11_spill] sm:$0xff]  ;;  %v2527_v8 = vld [vmem:[#allocation12_spill] sm:$0xff]  ;;  %v2528_v27 = vld [vmem:[#allocation13_spill] sm:$0xff] }
  0xf7   :  { %v2147_v61 = vpack.c.bf16 %v1210_v44, %v1209_v25  ;;  %v2149_v2 = vpack.c.bf16 %v1212_v16, %v1211_v55  ;;  %v2151_v11 = vpack.c.bf16 %v1214_v51, %v1213_v39  ;;  %v1724_v40 = vpack.c.bf16 %v2105_v47, %v2105_v47  ;;  %v2529_v55 = vld [vmem:[#allocation46_spill] sm:$0xff] }
  0xf8   :  { %v1472_v24 = vunpack.c.l.b16 %v2519_v18  ;;  %v1473_v4 = vunpack.c.h.b16 %v2519_v18  ;;  %v1474_v20 = vunpack.c.l.b16 %v2520_v12  ;;  %v2524_v10 = vpack.c.bf16 %v2523_v1, %v2523_v1 }
  0xf9   :  { %v1481_v31 = vunpack.c.l.b16 %v2525_v3  ;;  %v1482_v57 = vunpack.c.h.b16 %v2525_v3  ;;  %v2530_v16 = vpack.c.bf16 %v2529_v55, %v2529_v55  ;;  %v1490_v51 = vunpack.c.l.b16 %v2074_v32 }
  0xfa   :  { %v2166_v30 = vunpack.c.l.b16 %v2524_v10  ;;  %v2189_v15 = vunpack.c.l.b16 %v1699_v42  ;;  %v1499_v55 = vunpack.c.l.b16 %v2101_v6  ;;  %v2199_v10 = vunpack.c.l.b16 %v1704_v37 }
  0xfb   :  { %v2179_v39 = vunpack.c.l.b16 %v2530_v16  ;;  %v1508_v42 = vunpack.c.l.b16 %v2115_v52  ;;  %v1509_v44 = vunpack.c.h.b16 %v2115_v52  ;;  %v1510_v16 = vunpack.c.l.b16 %v2117_v5 }
  0xfc   :  { %v1511_v19 = vunpack.c.h.b16 %v2117_v5  ;;  %v2209_v1 = vunpack.c.l.b16 %v1709_v34  ;;  %v1517_v37 = vunpack.c.l.b16 %v2125_v54  ;;  %v1518_v25 = vunpack.c.h.b16 %v2125_v54 }
  0xfd   :  { %v1519_v52 = vunpack.c.l.b16 %v2127_v41  ;;  %v1520_v17 = vunpack.c.h.b16 %v2127_v41  ;;  %v2222_v34 = vunpack.c.l.b16 %v1714_v13  ;;  %v1526_v26 = vunpack.c.l.b16 %v2135_v7 }
  0xfe   :  { %v1527_v54 = vunpack.c.h.b16 %v2135_v7  ;;  %v1528_v0 = vunpack.c.l.b16 %v2137_v33  ;;  %v1529_v41 = vunpack.c.h.b16 %v2137_v33  ;;  %v2235_v60 = vunpack.c.l.b16 %v1719_v28 }
  0xff   :  { %v1535_v13 = vunpack.c.l.b16 %v2145_v9  ;;  %v1536_v7 = vunpack.c.h.b16 %v2145_v9  ;;  %v1537_v23 = vunpack.c.l.b16 %v2147_v61  ;;  %v1538_v33 = vunpack.c.h.b16 %v2147_v61 }
 0x100   :  { %v1539_v5 = vunpack.c.l.b16 %v2149_v2  ;;  %v1540_v14 = vunpack.c.h.b16 %v2149_v2  ;;  %v1541_v53 = vunpack.c.l.b16 %v2151_v11  ;;  %v1542_v59 = vunpack.c.h.b16 %v2151_v11 }
 0x101   :  { %v2248_v56 = vunpack.c.l.b16 %v1724_v40  ;;  %v1545_v28 = vsel %vm1544_vm1, %v1481_v31, %v1472_v24  ;;  %v1558_v47 = vsel %vm1544_vm1, %v1482_v57, %v1473_v4  ;;  %v2531_v40 = vunpack.c.l.b16 %v2526_v63 }
 0x102   :  { %v1547_v9 = vsel %vm1546_vm2, %v1490_v51, %v1545_v28  ;;  %v2532_v31 = vunpack.c.h.b16 %v2520_v12  ;;  %v2533_v51 = vunpack.c.h.b16 %v2526_v63  ;;  %v2534_v18 = vunpack.c.h.b16 %v2074_v32 }
 0x103   :  { %v1549_v61 = vsel %vm1548_vm3, %v1499_v55, %v1547_v9  ;;  %v1565_v24 = vsel %vm1544_vm1, %v2531_v40, %v1474_v20  ;;  %v2535_v4 = vunpack.c.l.b16 %v2079_v48  ;;  %v2536_v9 = vunpack.c.h.b16 %v2079_v48 }
 0x104   :  { %v1572_v28 = vsel %vm1544_vm1, %v2533_v51, %v2532_v31  ;;  %v1551_v55 = vsel %vm1550_vm4, %v1508_v42, %v1549_v61  ;;  %v1559_v3 = vsel %vm1546_vm2, %v2534_v18, %v1558_v47  ;;  %v2537_v63 = vunpack.c.h.b16 %v2101_v6 }
 0x105   :  { %v1566_v57 = vsel %vm1546_vm2, %v2535_v4, %v1565_v24  ;;  %v1573_v20 = vsel %vm1546_vm2, %v2536_v9, %v1572_v28  ;;  %v1553_v12 = vsel %vm1552_vm5, %v1517_v37, %v1551_v55  ;;  %v2538_v42 = vunpack.c.l.b16 %v2107_v45 }
 0x106   :  { %v1560_v40 = vsel %vm1548_vm3, %v2537_v63, %v1559_v3  ;;  %v2539_v61 = vunpack.c.h.b16 %v2107_v45  ;;  %v1555_v24 = vsel %vm1554_vm6, %v1526_v26, %v1553_v12  ;;  %v2544_v3 = vunpack.c.h.b16 %v2521_v50 }
 0x107   :  { %v1567_v32 = vsel %vm1548_vm3, %v2538_v42, %v1566_v57  ;;  %v1561_v48 = vsel %vm1550_vm4, %v1509_v44, %v1560_v40  ;;  %v1557_v6 = vsel %vm1556_vm7, %v1535_v13, %v1555_v24  ;;  %v2540_v44 = vunpack.c.l.b16 %v2521_v50 }
 0x108   :  { %v1574_v47 = vsel %vm1548_vm3, %v2539_v61, %v1573_v20  ;;  %v1568_v31 = vsel %vm1550_vm4, %v1510_v16, %v1567_v32  ;;  %v1562_v51 = vsel %vm1552_vm5, %v1518_v25, %v1561_v48  ;;  %v2541_v16 = vunpack.c.l.b16 %v2527_v8 }
 0x109   :  { %v1575_v37 = vsel %vm1550_vm4, %v1511_v19, %v1574_v47  ;;  %v1569_v28 = vsel %vm1552_vm5, %v1519_v52, %v1568_v31  ;;  %v1563_v45 = vsel %vm1554_vm6, %v1527_v54, %v1562_v51  ;;  %v2545_v4 = vunpack.c.h.b16 %v2527_v8 }
 0x10a   :  { %v1576_v55 = vsel %vm1552_vm5, %v1520_v17, %v1575_v37  ;;  %v1570_v18 = vsel %vm1554_vm6, %v1528_v0, %v1569_v28  ;;  %v1579_v19 = vsel %vm1544_vm1, %v2541_v16, %v2540_v44  ;;  %v1564_v13 = vsel %vm1556_vm7, %v1536_v7, %v1563_v45 }
 0x10b   :  { %v1577_v26 = vsel %vm1554_vm6, %v1529_v41, %v1576_v55  ;;  %v1571_v25 = vsel %vm1556_vm7, %v1537_v23, %v1570_v18  ;;  %v2542_v17 = vunpack.c.l.b16 %v2084_v36  ;;  %v2543_v0 = vunpack.c.l.b16 %v2109_v21 }
 0x10c   :  { %v1578_v52 = vsel %vm1556_vm7, %v1538_v33, %v1577_v26  ;;  %v1586_v57 = vsel %vm1544_vm1, %v2545_v4, %v2544_v3  ;;  %v2546_v7 = vunpack.c.l.b16 %v2522_v43  ;;  %v2547_v23 = vunpack.c.l.b16 %v2528_v27 }
 0x10d   :  { %v1580_v54 = vsel %vm1546_vm2, %v2542_v17, %v1579_v19  ;;  %v2548_v9 = vunpack.c.h.b16 %v2522_v43  ;;  %v2549_v20 = vunpack.c.h.b16 %v2528_v27  ;;  %v2550_v63 = vunpack.c.l.b16 %v2119_v22 }
 0x10e   :  { %v1581_v41 = vsel %vm1548_vm3, %v2543_v0, %v1580_v54  ;;  %v1593_v33 = vsel %vm1544_vm1, %v2547_v23, %v2546_v7  ;;  %v2551_v8 = vunpack.c.h.b16 %v2084_v36  ;;  %v2552_v42 = vunpack.c.l.b16 %v2091_v35 }
 0x10f   :  { %v1600_v12 = vsel %vm1544_vm1, %v2549_v20, %v2548_v9  ;;  %v1582_v50 = vsel %vm1550_vm4, %v2550_v63, %v1581_v41  ;;  %v2553_v61 = vunpack.c.h.b16 %v2091_v35  ;;  %v2554_v27 = vunpack.c.l.b16 %v2129_v58 }
 0x110   :  { %v1587_v40 = vsel %vm1546_vm2, %v2551_v8, %v1586_v57  ;;  %v1594_v32 = vsel %vm1546_vm2, %v2552_v42, %v1593_v33  ;;  %v2555_v24 = vunpack.c.h.b16 %v2109_v21  ;;  %v2556_v36 = vunpack.c.l.b16 %v2111_v49 }
 0x111   :  { %v1601_v43 = vsel %vm1546_vm2, %v2553_v61, %v1600_v12  ;;  %v1583_v47 = vsel %vm1552_vm5, %v2554_v27, %v1582_v50  ;;  %v2557_v37 = vunpack.c.h.b16 %v2111_v49  ;;  %v2558_v35 = vunpack.c.l.b16 %v2139_v62 }
 0x112   :  { %v1588_v48 = vsel %vm1548_vm3, %v2555_v24, %v1587_v40  ;;  %v1595_v31 = vsel %vm1548_vm3, %v2556_v36, %v1594_v32  ;;  %v2559_v55 = vunpack.c.h.b16 %v2119_v22  ;;  %v2560_v21 = vunpack.c.l.b16 %v2121_v29 }
 0x113   :  { %v1602_v51 = vsel %vm1548_vm3, %v2557_v37, %v1601_v43  ;;  %v1584_v28 = vsel %vm1554_vm6, %v2558_v35, %v1583_v47  ;;  %v2561_v26 = vunpack.c.h.b16 %v2121_v29  ;;  %v2562_v16 = vunpack.c.h.b16 %v2129_v58 }
 0x114   :  { %v1589_v45 = vsel %vm1550_vm4, %v2559_v55, %v1588_v48  ;;  %v1596_v18 = vsel %vm1550_vm4, %v2560_v21, %v1595_v31  ;;  %v1585_v49 = vsel %vm1556_vm7, %v1539_v5, %v1584_v28  ;;  %v2563_v17 = vunpack.c.l.b16 %v2131_v38 }
 0x115   :  { %v1603_v44 = vsel %vm1550_vm4, %v2561_v26, %v1602_v51  ;;  %v1590_v19 = vsel %vm1552_vm5, %v2562_v16, %v1589_v45  ;;  %v2564_v54 = vunpack.c.h.b16 %v2131_v38  ;;  %v2565_v41 = vunpack.c.h.b16 %v2139_v62 }
 0x116   :  { %v1597_v22 = vsel %vm1552_vm5, %v2563_v17, %v1596_v18  ;;  %v2566_v3 = vunpack.c.l.b16 %v2141_v46  ;;  %v2567_v58 = vunpack.c.h.b16 %v2141_v46  ;;  %v1607_v57 = vsel %vm1544_vm1, %v2179_v39, %v2166_v30 }
 0x117   :  { %v1604_v0 = vsel %vm1552_vm5, %v2564_v54, %v1603_v44  ;;  %v1591_v29 = vsel %vm1554_vm6, %v2565_v41, %v1590_v19  ;;  %v1608_v46 = vsel %vm1546_vm2, %v2189_v15, %v1607_v57  ;;  %v1614_v33 = vpack.c.b16 %v1564_v13, %v1557_v6 }
 0x118   :  { %v1598_v5 = vsel %vm1554_vm6, %v2566_v3, %v1597_v22  ;;  %v1605_v4 = vsel %vm1554_vm6, %v2567_v58, %v1604_v0  ;;  %v1592_v38 = vsel %vm1556_vm7, %v1540_v14, %v1591_v29  ;;  %v1609_v23 = vsel %vm1548_vm3, %v2199_v10, %v1608_v46 }
 0x119   :  { %v1599_v62 = vsel %vm1556_vm7, %v1541_v53, %v1598_v5  ;;  %v1606_v7 = vsel %vm1556_vm7, %v1542_v59, %v1605_v4  ;;  %v1615_v30 = vpack.c.b16 %v1578_v52, %v1571_v25  ;;  %v1616_v39 = vpack.c.b16 %v1592_v38, %v1585_v49  ;;  %1624 = vst [vmem:[#allocation5] sm:$0xff] %v1614_v33 }
 0x11a   :  { %v1610_v2 = vsel %vm1550_vm4, %v2209_v1, %v1609_v23  ;;  %v1617_v14 = vpack.c.b16 %v1606_v7, %v1599_v62 }
 0x11b   :  { %v1611_v53 = vsel %vm1552_vm5, %v2222_v34, %v1610_v2  ;;  %1625 = vst [vmem:[#allocation5 + $0x8] sm:$0xff] %v1615_v30  ;;  %1626 = vst [vmem:[#allocation5 + $0x10] sm:$0xff] %v1616_v39 }
 0x11c   :  { %v1612_v11 = vsel %vm1554_vm6, %v2235_v60, %v1611_v53  ;;  %1627 = vst [vmem:[#allocation5 + $0x18] sm:$0xff] %v1617_v14 }
 0x11d   :  { %v1613_v15 = vsel %vm1556_vm7, %v2248_v56, %v1612_v11 }
 0x11e   :  { %v1618_v59 = vpack.c.b16 %v1613_v15, %v1613_v15 }
 0x120   :  { %1629 = vst.msk [vmem:[#allocation5 + $0x20] sm:$0xf] %vm1628_vm8, %v1618_v59 }
 0x121   :  { %1762 = shalt.err (!%p1759_p12)
}
 0x122   :  { %s1763_s24 = scalar_lea.hbm %s2424_s1, 576 }
 0x123   :  { %p1764_p13 = scmp.ne.s32.totalorder %s2424_s1, %s1763_s24  ;;  %p1767_p0 = scmp.lt.u32.totalorder %s1763_s24, %s2424_s1 }
 0x125   :  { %p1769_p1 = pnand %p1767_p0, %p1764_p13 }
 0x127   :  { %1772 = shalt.err (!%p1769_p1)
}
 0x128   :  { %1639 = dma.vmem_to_hbm [thread:$0]  %s1637_s20, 576, %s2424_s1, [#allocation4]  }
 0x129   :  { %1775 = dma.done.wait [#allocation4], 576  }
 0x12a   :  { %1776 = vsyncadd [#allocation4], 4294966720 }
 0x12b   :  { %1643 = vsyncpa [#allocation3], 1 }
 0x12c   :  { %1644 = vsyncpa [#allocation4], 1 }

</bundles_post_ra>
